<compile_context>
chip_gen: v7x
topology: tpu7x:2x2x1
jax: 0.10.0
libtpu: 0.0.40
codegen_flags: <defaults>
</compile_context>

<pallas_src>
import functools

import jax
import jax.numpy as jnp
from jax.experimental import pallas as pl
from jax.experimental.pallas import tpu as pltpu

# -----------------------------------------------------------------------------
# Small model configuration (synthetic, deterministic)
# -----------------------------------------------------------------------------
IMG_SIZE = 32                       # input image H = W
IN_CH = 3                           # RGB
PATCH = 8                           # patch size -> 4x4 token grid
GRID = IMG_SIZE // PATCH
N_TOK = GRID * GRID                 # 16 image tokens
CPP = IN_CH * PATCH * PATCH         # 192 patch features
EMBED = 64                          # image / prompt embedding dim
MLP_HID = 128
UPSCALE_CH = 32                     # channels of the upscaled mask embedding
NUM_MASK_TOKENS = 4
NUM_POINTS = 3                      # point prompts per image
LOW_RES = GRID * 2                  # 8x8 low-res mask
N_DEC_TOK = 1 + NUM_MASK_TOKENS + NUM_POINTS   # iou + mask tokens + sparse prompts = 8


# -----------------------------------------------------------------------------
# Parameters (deterministic synthetic init, same layout as the original module)
# -----------------------------------------------------------------------------
def init_params(key):
    keys = iter(jax.random.split(key, 80))

    def nrm(shape, scale=0.02):
        return (jax.random.normal(next(keys), shape) * scale).astype(jnp.float32)

    p = {}
    p["pixel_mean"] = jnp.array([123.675, 116.28, 103.53], jnp.float32)
    p["pixel_std"] = jnp.array([58.395, 57.12, 57.375], jnp.float32)

    # --- image encoder (patch embed + one transformer block) ---
    p["patch_w"] = nrm((CPP, EMBED))
    p["patch_b"] = jnp.zeros((EMBED,), jnp.float32)
    p["pos_embed"] = nrm((N_TOK, EMBED))
    for n in ("enc_wq", "enc_wk", "enc_wv", "enc_wo"):
        p[n] = nrm((EMBED, EMBED))
    for n in ("enc_bq", "enc_bk", "enc_bv", "enc_bo"):
        p[n] = jnp.zeros((EMBED,), jnp.float32)
    p["enc_mlp_w1"] = nrm((EMBED, MLP_HID)); p["enc_mlp_b1"] = jnp.zeros((MLP_HID,), jnp.float32)
    p["enc_mlp_w2"] = nrm((MLP_HID, EMBED)); p["enc_mlp_b2"] = jnp.zeros((EMBED,), jnp.float32)
    for n in ("enc_ln1", "enc_ln2"):
        p[n + "_g"] = jnp.ones((EMBED,), jnp.float32)
        p[n + "_b"] = jnp.zeros((EMBED,), jnp.float32)

    # --- prompt encoder ---
    p["pe_gauss"] = nrm((2, EMBED // 2), scale=1.0)
    p["point_emb_pos"] = nrm((EMBED,))
    p["point_emb_neg"] = nrm((EMBED,))
    p["no_mask_embed"] = nrm((EMBED,))

    # --- mask decoder (simplified two-way transformer) ---
    p["iou_token"] = nrm((EMBED,))
    p["mask_tokens"] = nrm((NUM_MASK_TOKENS, EMBED))
    for blk in ("dec_sa", "dec_ca", "dec_ic"):
        for n in ("wq", "wk", "wv"):
            p[f"{blk}_{n}"] = nrm((EMBED, EMBED))
        for n in ("bq", "bk", "bv"):
            p[f"{blk}_{n}"] = jnp.zeros((EMBED,), jnp.float32)
    p["dec_mlp_w1"] = nrm((EMBED, MLP_HID)); p["dec_mlp_b1"] = jnp.zeros((MLP_HID,), jnp.float32)
    p["dec_mlp_w2"] = nrm((MLP_HID, EMBED)); p["dec_mlp_b2"] = jnp.zeros((EMBED,), jnp.float32)
    for n in ("dec_ln1", "dec_ln2", "dec_ln3", "dec_ln4"):
        p[n + "_g"] = jnp.ones((EMBED,), jnp.float32)
        p[n + "_b"] = jnp.zeros((EMBED,), jnp.float32)
    p["dec_up_w"] = nrm((EMBED, UPSCALE_CH)); p["dec_up_b"] = jnp.zeros((UPSCALE_CH,), jnp.float32)
    p["hyper_w1"] = nrm((EMBED, EMBED)); p["hyper_b1"] = jnp.zeros((EMBED,), jnp.float32)
    p["hyper_w2"] = nrm((EMBED, UPSCALE_CH)); p["hyper_b2"] = jnp.zeros((UPSCALE_CH,), jnp.float32)
    p["iou_w1"] = nrm((EMBED, EMBED)); p["iou_b1"] = jnp.zeros((EMBED,), jnp.float32)
    p["iou_w2"] = nrm((EMBED, NUM_MASK_TOKENS)); p["iou_b2"] = jnp.zeros((NUM_MASK_TOKENS,), jnp.float32)
    return p


# -----------------------------------------------------------------------------
# Weight packing: all 2-D params sharing a column width are row-concatenated
# into one slab (rows padded to multiples of 8 so in-kernel slices stay
# sublane-aligned).  Cuts ~50 tiny VMEM operands / DMA descriptors down to 5.
# -----------------------------------------------------------------------------
class WeightPack:
    def __init__(self, params2d):
        self.offsets = {}                       # name -> (width, row_offset, n_rows)
        self.slabs = {}                         # width -> packed (R, width) f32 array
        by_width = {}
        for name in sorted(params2d):           # deterministic packing order
            arr = jnp.asarray(params2d[name], jnp.float32)
            by_width.setdefault(int(arr.shape[1]), []).append((name, arr))
        for width, items in sorted(by_width.items()):
            chunks, off = [], 0
            for name, arr in items:
                rows = int(arr.shape[0])
                rows_pad = -(-rows // 8) * 8
                if rows_pad > rows:
                    arr = jnp.concatenate(
                        [arr, jnp.zeros((rows_pad - rows, width), jnp.float32)], axis=0)
                chunks.append(arr)
                self.offsets[name] = (width, off, rows)
                off += rows_pad
            self.slabs[width] = jnp.concatenate(chunks, axis=0)


def _dense_pe_tokens(pe_gauss):
    """Dense positional encoding on the GRIDxGRID lattice, in token-major form."""
    ys = (jnp.arange(GRID, dtype=jnp.float32) + 0.5) / GRID
    xs = (jnp.arange(GRID, dtype=jnp.float32) + 0.5) / GRID
    gy, gx = jnp.meshgrid(ys, xs, indexing="ij")
    coords = jnp.stack([gx, gy], axis=-1)                    # (GRID, GRID, 2)
    c = 2.0 * jnp.pi * ((2.0 * coords - 1.0) @ pe_gauss)
    pe = jnp.concatenate([jnp.sin(c), jnp.cos(c)], axis=-1)  # (GRID, GRID, EMBED)
    return pe.reshape(N_TOK, EMBED)


def prepare_params(p):
    """Fold normalization into patch embed, fuse QKV / KV, pack into slabs."""
    two_d = {}

    def mat(name, arr):
        two_d[name] = jnp.asarray(arr, jnp.float32)

    def row(name, arr):
        two_d[name] = jnp.asarray(arr, jnp.float32).reshape(1, -1)

    # (x - mean) / std is affine per input channel -> fold into patch weights/bias.
    inv_std = 1.0 / p["pixel_std"]
    feat_scale = jnp.repeat(inv_std, PATCH * PATCH)                    # (CPP,)
    feat_shift = jnp.repeat(p["pixel_mean"] * inv_std, PATCH * PATCH)  # (CPP,)
    mat("patch_w", p["patch_w"] * feat_scale[:, None])
    row("patch_b", p["patch_b"] - feat_shift @ p["patch_w"])

    mat("pos_embed", p["pos_embed"])
    mat("dense_pe", _dense_pe_tokens(p["pe_gauss"]))

    # encoder block (fused QKV)
    mat("enc_wqkv", jnp.concatenate([p["enc_wq"], p["enc_wk"], p["enc_wv"]], axis=1))
    row("enc_bqkv", jnp.concatenate([p["enc_bq"], p["enc_bk"], p["enc_bv"]]))
    mat("enc_wo", p["enc_wo"]); row("enc_bo", p["enc_bo"])
    mat("enc_mlp_w1", p["enc_mlp_w1"]); row("enc_mlp_b1", p["enc_mlp_b1"])
    mat("enc_mlp_w2", p["enc_mlp_w2"]); row("enc_mlp_b2", p["enc_mlp_b2"])
    for n in ("enc_ln1", "enc_ln2", "dec_ln1", "dec_ln2", "dec_ln3", "dec_ln4"):
        row(n + "_g", p[n + "_g"]); row(n + "_b", p[n + "_b"])
    row("no_mask_embed", p["no_mask_embed"])

    # decoder: token self-attention (fused QKV)
    mat("sa_wqkv", jnp.concatenate([p["dec_sa_wq"], p["dec_sa_wk"], p["dec_sa_wv"]], axis=1))
    row("sa_bqkv", jnp.concatenate([p["dec_sa_bq"], p["dec_sa_bk"], p["dec_sa_bv"]]))
    # decoder: tokens->image cross-attention (K uses src+pos, V uses src -> keep separate)
    mat("ca_wq", p["dec_ca_wq"]); row("ca_bq", p["dec_ca_bq"])
    mat("ca_wk", p["dec_ca_wk"]); row("ca_bk", p["dec_ca_bk"])
    mat("ca_wv", p["dec_ca_wv"]); row("ca_bv", p["dec_ca_bv"])
    mat("dec_mlp_w1", p["dec_mlp_w1"]); row("dec_mlp_b1", p["dec_mlp_b1"])
    mat("dec_mlp_w2", p["dec_mlp_w2"]); row("dec_mlp_b2", p["dec_mlp_b2"])
    # decoder: image->tokens cross-attention (K/V share input -> fused KV)
    mat("ic_wq", p["dec_ic_wq"]); row("ic_bq", p["dec_ic_bq"])
    mat("ic_wkv", jnp.concatenate([p["dec_ic_wk"], p["dec_ic_wv"]], axis=1))
    row("ic_bkv", jnp.concatenate([p["dec_ic_bk"], p["dec_ic_bv"]]))
    # heads
    mat("up_w", p["dec_up_w"]); row("up_b", p["dec_up_b"])
    mat("hyper_w1", p["hyper_w1"]); row("hyper_b1", p["hyper_b1"])
    mat("hyper_w2", p["hyper_w2"]); row("hyper_b2", p["hyper_b2"])
    mat("iou_w1", p["iou_w1"]); row("iou_b1", p["iou_b1"])
    mat("iou_w2", p["iou_w2"]); row("iou_b2", p["iou_b2"])

    pack = WeightPack(two_d)
    aux = {
        "fixed_tokens": jnp.concatenate([p["iou_token"][None, :], p["mask_tokens"]], axis=0),
        "pe_gauss": p["pe_gauss"],
        "point_emb_pos": p["point_emb_pos"],
        "point_emb_neg": p["point_emb_neg"],
    }
    return pack, aux


# -----------------------------------------------------------------------------
# The fused SAM kernel: patch embed + encoder block + mask decoder, per image.
# -----------------------------------------------------------------------------
def make_fused_kernel(offsets, widths):
    n_w = len(widths)

    def kernel(*refs):
        xp_ref, tok0_ref = refs[0], refs[1]
        slab = dict(zip(widths, refs[2:2 + n_w]))
        masks_ref, iou_ref = refs[2 + n_w], refs[3 + n_w]

        def W(name):
            width, off, rows = offsets[name]
            return slab[width][off:off + rows, :]          # static, sublane-aligned slice

        def linear(x, wname, bname, act=None):
            y = jnp.dot(x, W(wname), preferred_element_type=jnp.float32) + W(bname)
            if act == "relu":
                y = jnp.maximum(y, 0.0)
            elif act == "gelu":
                y = jax.nn.gelu(y, approximate=True)
            return y

        def layer_norm(x, name, eps=1e-6):
            m = jnp.mean(x, axis=-1, keepdims=True)
            d = x - m
            v = jnp.mean(d * d, axis=-1, keepdims=True)
            return d * jax.lax.rsqrt(v + eps) * W(name + "_g") + W(name + "_b")

        def attention(q, k, v):
            scale = float(q.shape[-1]) ** -0.5
            # contract last dims directly (no in-kernel transpose of K)
            s = jax.lax.dot_general(q, k, (((1,), (1,)), ((), ())),
                                    preferred_element_type=jnp.float32) * scale
            s = s - jnp.max(s, axis=-1, keepdims=True)
            p = jnp.exp(s)
            p = p * pl.reciprocal(jnp.sum(p, axis=-1, keepdims=True), approx=True)
            return jnp.dot(p, v, preferred_element_type=jnp.float32)

        # ---------------- image encoder: patch embed + one transformer block ----
        x = xp_ref[...]                                            # (N_TOK, CPP) raw patches
        t = jnp.dot(x, W("patch_w"), preferred_element_type=jnp.float32) + W("patch_b")
        t = t + W("pos_embed")

        h = layer_norm(t, "enc_ln1")
        qkv = linear(h, "enc_wqkv", "enc_bqkv")                    # (N_TOK, 3*EMBED)
        a = attention(qkv[:, :EMBED], qkv[:, EMBED:2 * EMBED], qkv[:, 2 * EMBED:])
        t = t + linear(a, "enc_wo", "enc_bo")
        h = layer_norm(t, "enc_ln2")
        h = linear(h, "enc_mlp_w1", "enc_mlp_b1", act="gelu")
        t = t + linear(h, "enc_mlp_w2", "enc_mlp_b2")              # (N_TOK, EMBED)

        # ---------------- mask decoder (simplified two-way transformer) ---------
        src = t + W("no_mask_embed")          # dense "no mask" prompt embedding
        pos = W("dense_pe")                   # (N_TOK, EMBED)
        tok = tok0_ref[...]                   # (N_DEC_TOK, EMBED): [iou, mask x4, sparse x3]

        # 1) token self-attention (fused QKV)
        qkv = linear(tok, "sa_wqkv", "sa_bqkv")
        a = attention(qkv[:, :EMBED], qkv[:, EMBED:2 * EMBED], qkv[:, 2 * EMBED:])
        tok = layer_norm(tok + a, "dec_ln1")

        # 2) cross-attention: tokens -> image (K uses src+pos, V uses src)
        q = linear(tok, "ca_wq", "ca_bq")
        k = linear(src + pos, "ca_wk", "ca_bk")
        v = linear(src, "ca_wv", "ca_bv")
        tok = layer_norm(tok + attention(q, k, v), "dec_ln2")

        # 3) token MLP
        h = linear(tok, "dec_mlp_w1", "dec_mlp_b1", act="relu")
        tok = layer_norm(tok + linear(h, "dec_mlp_w2", "dec_mlp_b2"), "dec_ln3")

        # 4) cross-attention: image -> tokens (K/V share the token input: fused)
        q = linear(src + pos, "ic_wq", "ic_bq")
        kv = linear(tok, "ic_wkv", "ic_bkv")                       # (N_DEC_TOK, 2*EMBED)
        src = layer_norm(src + attention(q, kv[:, :EMBED], kv[:, EMBED:]), "dec_ln4")

        iou_tok = tok[0:1, :]
        mask_tok = tok[1:1 + NUM_MASK_TOKENS, :]

        # mask head on the GRIDxGRID lattice; the 2x nearest-neighbour upsample is pure
        # row duplication and commutes with gelu + matmul, so it is applied outside.
        up = linear(src, "up_w", "up_b", act="gelu")               # (N_TOK, UPSCALE_CH)
        hyper = linear(mask_tok, "hyper_w1", "hyper_b1", act="relu")
        hyper = linear(hyper, "hyper_w2", "hyper_b2")              # (NUM_MASK, UPSCALE_CH)
        masks_ref[...] = jax.lax.dot_general(                      # hyper @ up^T, no transpose
            hyper, up, (((1,), (1,)), ((), ())),
            preferred_element_type=jnp.float32)                    # (NUM_MASK, N_TOK)

        iou = linear(iou_tok, "iou_w1", "iou_b1", act="relu")
        iou_ref[...] = linear(iou, "iou_w2", "iou_b2")             # (1, NUM_MASK)

    return kernel


# -----------------------------------------------------------------------------
# Forward builder
# -----------------------------------------------------------------------------
def encode_point_prompts(point_coords, point_labels, aux):
    """Batched random-Fourier point prompt encoding.  coords: (B, P, 2), labels: (B, P)."""
    coords01 = (point_coords + 0.5) / float(IMG_SIZE)
    c = 2.0 * jnp.pi * ((2.0 * coords01 - 1.0) @ aux["pe_gauss"])
    pe = jnp.concatenate([jnp.sin(c), jnp.cos(c)], axis=-1)        # (B, P, EMBED)
    pt = jnp.where(point_labels[..., None] == 1,
                   aux["point_emb_pos"][None, None, :],
                   aux["point_emb_neg"][None, None, :])
    return pe + pt


def build_sam_forward(params):
    pack, aux = prepare_params(params)
    widths = tuple(sorted(pack.slabs))
    slabs = [pack.slabs[w] for w in widths]
    kernel = make_fused_kernel(pack.offsets, widths)

    def fused_call(xp, tok0):
        B = xp.shape[0]
        in_specs = [
            pl.BlockSpec((None, N_TOK, CPP), lambda b: (b, 0, 0)),        # per-image patches
            pl.BlockSpec((None, N_DEC_TOK, EMBED), lambda b: (b, 0, 0)),  # per-image tokens
        ] + [pl.BlockSpec(s.shape, lambda b: (0, 0)) for s in slabs]      # shared weight slabs
        out_specs = (
            pl.BlockSpec((None, NUM_MASK_TOKENS, N_TOK), lambda b: (b, 0, 0)),
            pl.BlockSpec((None, 1, NUM_MASK_TOKENS), lambda b: (b, 0, 0)),
        )
        out_shape = (
            jax.ShapeDtypeStruct((B, NUM_MASK_TOKENS, N_TOK), jnp.float32),
            jax.ShapeDtypeStruct((B, 1, NUM_MASK_TOKENS), jnp.float32),
        )
        return pl.pallas_call(
            kernel,
            grid=(B,),
            in_specs=in_specs,
            out_specs=out_specs,
            out_shape=out_shape,
            compiler_params=pltpu.CompilerParams(
                dimension_semantics=("parallel",)),   # shard the batch over TCs (v7x)
        )(xp, tok0, *slabs)

    @functools.partial(jax.jit, static_argnames=("multimask_output",))
    def forward_batched(images, point_set, point_label, multimask_output=False):
        B = images.shape[0]
        # unfold into non-overlapping patches == conv(stride=PATCH); pure layout op,
        # pixel normalization is already folded into the patch-embed weights.
        xp = images.reshape(B, IN_CH, GRID, PATCH, GRID, PATCH)
        xp = xp.transpose(0, 2, 4, 1, 3, 5).reshape(B, N_TOK, CPP).astype(jnp.float32)

        sparse = encode_point_prompts(point_set, point_label, aux)          # (B, P, EMBED)
        fixed = jnp.broadcast_to(aux["fixed_tokens"][None],
                                 (B, 1 + NUM_MASK_TOKENS, EMBED))
        tok0 = jnp.concatenate([fixed, sparse], axis=1).astype(jnp.float32)  # (B, 8, EMBED)

        masks_small, _iou_pred = fused_call(xp, tok0)                       # (B, 4, 16), (B, 1, 4)

        # nearest-neighbour 2x upsample of the per-mask GRIDxGRID logits -> LOW_RES
        m = masks_small.reshape(B, NUM_MASK_TOKENS, GRID, GRID)
        m = jnp.repeat(jnp.repeat(m, 2, axis=2), 2, axis=3)                 # (B, 4, 8, 8)
        sl = slice(1, None) if multimask_output else slice(0, 1)
        return m[:, sl]

    def forward(inputs, multimask_output=False):
        images = inputs["images"]                                           # (B, 3, 32, 32)
        point_set = jnp.stack([r["point_set"] for r in inputs["prompt"]], axis=0)
        point_label = jnp.stack([r["point_label"] for r in inputs["prompt"]], axis=0)
        # TODO(synk): CLIP tokenizer / CLIPTextModel text prompting, box / mask_input prompts
        #             and bilinear postprocess_masks are not translated.
        pred = forward_batched(images, point_set, point_label,
                               multimask_output=multimask_output)
        return {"pred_matte": pred}

    return forward


# -----------------------------------------------------------------------------
# Main
# -----------------------------------------------------------------------------
if __name__ == "__main__":
    key = jax.random.PRNGKey(0)
    k_img, k_pts, k_param = jax.random.split(key, 3)

    B = 2
    images = jax.random.uniform(k_img, (B, IN_CH, IMG_SIZE, IMG_SIZE),
                                dtype=jnp.float32, minval=0.0, maxval=255.0)
    pts_keys = jax.random.split(k_pts, B)
    prompt = []
    for b in range(B):
        pts = jax.random.uniform(pts_keys[b], (NUM_POINTS, 2),
                                 dtype=jnp.float32, minval=0.0, maxval=float(IMG_SIZE - 1))
        labels = jnp.array([1, 0, 1], dtype=jnp.int32)
        prompt.append({"point_set": pts, "point_label": labels})

    params = init_params(k_param)
    sam_forward = build_sam_forward(params)

    outs = sam_forward({"images": images, "prompt": prompt}, multimask_output=False)
    pred = jax.block_until_ready(outs["pred_matte"])
    assert pred.shape == (B, 1, LOW_RES, LOW_RES), pred.shape
    assert bool(jnp.all(jnp.isfinite(pred)))
    print("KERNEL_OK")
</pallas_src>

<mosaic_0001>
module attributes {stable_mosaic.version = 11 : i64} {
  func.func @kernel(%arg0: i32, %arg1: memref<1x16x192xf32, #tpu.memory_space<vmem>>, %arg2: memref<1x8x64xf32, #tpu.memory_space<vmem>>, %arg3: memref<72x4xf32, #tpu.memory_space<vmem>>, %arg4: memref<144x32xf32, #tpu.memory_space<vmem>>, %arg5: memref<1112x64xf32, #tpu.memory_space<vmem>>, %arg6: memref<216x128xf32, #tpu.memory_space<vmem>>, %arg7: memref<144x192xf32, #tpu.memory_space<vmem>>, %arg8: memref<1x4x16xf32, #tpu.memory_space<vmem>>, %arg9: memref<1x1x4xf32, #tpu.memory_space<vmem>>) attributes {dimension_semantics = [#tpu.dimension_semantics<parallel>], iteration_bounds = array<i64: 2>, scalar_prefetch = 0 : i64, scratch_operands = 0 : i64, tpu.core_type = #tpu.core_type<tc>, window_params = [{transform_indices = @transform_0, window_bounds = array<i64: 1, 16, 192>}, {transform_indices = @transform_1, window_bounds = array<i64: 1, 8, 64>}, {pipeline_mode = #tpu.pipeline_mode<synchronous>, transform_indices = @transform_2, window_bounds = array<i64: 72, 4>}, {pipeline_mode = #tpu.pipeline_mode<synchronous>, transform_indices = @transform_3, window_bounds = array<i64: 144, 32>}, {pipeline_mode = #tpu.pipeline_mode<synchronous>, transform_indices = @transform_4, window_bounds = array<i64: 1112, 64>}, {pipeline_mode = #tpu.pipeline_mode<synchronous>, transform_indices = @transform_5, window_bounds = array<i64: 216, 128>}, {pipeline_mode = #tpu.pipeline_mode<synchronous>, transform_indices = @transform_6, window_bounds = array<i64: 144, 192>}, {transform_indices = @transform_7, window_bounds = array<i64: 1, 4, 16>}, {transform_indices = @transform_8, window_bounds = array<i64: 1, 1, 4>}]} {
    %c0 = arith.constant 0 : index
    %c0_0 = arith.constant 0 : index
    %c0_1 = arith.constant 0 : index
    %0 = vector.load %arg1[%c0, %c0_0, %c0_1] : memref<1x16x192xf32, #tpu.memory_space<vmem>>, vector<1x16x192xf32>
    %1 = vector.shape_cast %0 : vector<1x16x192xf32> to vector<16x192xf32>
    %c904 = arith.constant 904 : index
    %c0_2 = arith.constant 0 : index
    %2 = vector.load %arg5[%c904, %c0_2] : memref<1112x64xf32, #tpu.memory_space<vmem>>, vector<192x64xf32>
    %cst = arith.constant dense<0.000000e+00> : vector<16x64xf32>
    %3 = tpu.matmul %1, %2, %cst {dimension_numbers = #tpu.dot_dimension_numbers<[1], [0], [0], [1], [0, 0, 1, 1], [], []>} : vector<16x192xf32>, vector<192x64xf32>, vector<16x64xf32> -> vector<16x64xf32>
    %c896 = arith.constant 896 : index
    %c0_3 = arith.constant 0 : index
    %4 = vector.load %arg5[%c896, %c0_3] : memref<1112x64xf32, #tpu.memory_space<vmem>>, vector<1x64xf32>
    %5 = vector.broadcast %4 : vector<1x64xf32> to vector<16x64xf32>
    %6 = arith.addf %3, %5 : vector<16x64xf32>
    %c1096 = arith.constant 1096 : index
    %c0_4 = arith.constant 0 : index
    %7 = vector.load %arg5[%c1096, %c0_4] : memref<1112x64xf32, #tpu.memory_space<vmem>>, vector<16x64xf32>
    %8 = arith.addf %6, %7 : vector<16x64xf32>
    %cst_5 = arith.constant dense<0.000000e+00> : vector<16xf32>
    %9 = vector.multi_reduction <add>, %8, %cst_5 [1] : vector<16x64xf32> to vector<16xf32>
    %10 = vector.shape_cast %9 : vector<16xf32> to vector<16x1xf32>
    %cst_6 = arith.constant 6.400000e+01 : f32
    %11 = vector.broadcast %cst_6 : f32 to vector<16x1xf32>
    %12 = arith.divf %10, %11 : vector<16x1xf32>
    %13 = vector.broadcast %12 : vector<16x1xf32> to vector<16x64xf32>
    %14 = arith.subf %8, %13 : vector<16x64xf32>
    %15 = arith.mulf %14, %14 : vector<16x64xf32>
    %cst_7 = arith.constant dense<0.000000e+00> : vector<16xf32>
    %16 = vector.multi_reduction <add>, %15, %cst_7 [1] : vector<16x64xf32> to vector<16xf32>
    %17 = vector.shape_cast %16 : vector<16xf32> to vector<16x1xf32>
    %cst_8 = arith.constant 6.400000e+01 : f32
    %18 = vector.broadcast %cst_8 : f32 to vector<16x1xf32>
    %19 = arith.divf %17, %18 : vector<16x1xf32>
    %cst_9 = arith.constant 9.99999997E-7 : f32
    %20 = vector.broadcast %cst_9 : f32 to vector<16x1xf32>
    %21 = arith.addf %19, %20 : vector<16x1xf32>
    %22 = math.rsqrt %21 : vector<16x1xf32>
    %23 = vector.broadcast %22 : vector<16x1xf32> to vector<16x64xf32>
    %24 = arith.mulf %14, %23 : vector<16x64xf32>
    %c448 = arith.constant 448 : index
    %c0_10 = arith.constant 0 : index
    %25 = vector.load %arg5[%c448, %c0_10] : memref<1112x64xf32, #tpu.memory_space<vmem>>, vector<1x64xf32>
    %26 = vector.broadcast %25 : vector<1x64xf32> to vector<16x64xf32>
    %27 = arith.mulf %24, %26 : vector<16x64xf32>
    %c440 = arith.constant 440 : index
    %c0_11 = arith.constant 0 : index
    %28 = vector.load %arg5[%c440, %c0_11] : memref<1112x64xf32, #tpu.memory_space<vmem>>, vector<1x64xf32>
    %29 = vector.broadcast %28 : vector<1x64xf32> to vector<16x64xf32>
    %30 = arith.addf %27, %29 : vector<16x64xf32>
    %c8 = arith.constant 8 : index
    %c0_12 = arith.constant 0 : index
    %31 = vector.load %arg7[%c8, %c0_12] : memref<144x192xf32, #tpu.memory_space<vmem>>, vector<64x192xf32>
    %cst_13 = arith.constant dense<0.000000e+00> : vector<16x192xf32>
    %32 = tpu.matmul %30, %31, %cst_13 {dimension_numbers = #tpu.dot_dimension_numbers<[1], [0], [0], [1], [0, 0, 1, 1], [], []>} : vector<16x64xf32>, vector<64x192xf32>, vector<16x192xf32> -> vector<16x192xf32>
    %c0_14 = arith.constant 0 : index
    %c0_15 = arith.constant 0 : index
    %33 = vector.load %arg7[%c0_14, %c0_15] : memref<144x192xf32, #tpu.memory_space<vmem>>, vector<1x192xf32>
    %34 = vector.broadcast %33 : vector<1x192xf32> to vector<16x192xf32>
    %35 = arith.addf %32, %34 : vector<16x192xf32>
    %36 = vector.extract_strided_slice %35 {offsets = [0, 0], sizes = [16, 64], strides = [1, 1]} : vector<16x192xf32> to vector<16x64xf32>
    %37 = vector.extract_strided_slice %35 {offsets = [0, 64], sizes = [16, 64], strides = [1, 1]} : vector<16x192xf32> to vector<16x64xf32>
    %38 = vector.extract_strided_slice %35 {offsets = [0, 128], sizes = [16, 64], strides = [1, 1]} : vector<16x192xf32> to vector<16x64xf32>
    %cst_16 = arith.constant dense<0.000000e+00> : vector<16x16xf32>
    %39 = tpu.matmul %36, %37, %cst_16 {dimension_numbers = #tpu.dot_dimension_numbers<[1], [1], [0], [0], [0, 0, 1, 0], [], []>} : vector<16x64xf32>, vector<16x64xf32>, vector<16x16xf32> -> vector<16x16xf32>
    %cst_17 = arith.constant 1.250000e-01 : f32
    %40 = vector.broadcast %cst_17 : f32 to vector<16x16xf32>
    %41 = arith.mulf %39, %40 : vector<16x16xf32>
    %cst_18 = arith.constant dense<0xFF800000> : vector<16xf32>
    %42 = vector.multi_reduction <maximumf>, %41, %cst_18 [1] : vector<16x16xf32> to vector<16xf32>
    %43 = vector.shape_cast %42 : vector<16xf32> to vector<16x1xf32>
    %44 = vector.broadcast %43 : vector<16x1xf32> to vector<16x16xf32>
    %45 = arith.subf %41, %44 : vector<16x16xf32>
    %46 = math.exp %45 : vector<16x16xf32>
    %cst_19 = arith.constant dense<0.000000e+00> : vector<16xf32>
    %47 = vector.multi_reduction <add>, %46, %cst_19 [1] : vector<16x16xf32> to vector<16xf32>
    %48 = vector.shape_cast %47 : vector<16xf32> to vector<16x1xf32>
    %49 = tpu.reciprocal %48 {approx = true} : vector<16x1xf32> -> vector<16x1xf32>
    %50 = vector.broadcast %49 : vector<16x1xf32> to vector<16x16xf32>
    %51 = arith.mulf %46, %50 : vector<16x16xf32>
    %cst_20 = arith.constant dense<0.000000e+00> : vector<16x64xf32>
    %52 = tpu.matmul %51, %38, %cst_20 {dimension_numbers = #tpu.dot_dimension_numbers<[1], [0], [0], [1], [0, 0, 1, 1], [], []>} : vector<16x16xf32>, vector<16x64xf32>, vector<16x64xf32> -> vector<16x64xf32>
    %c608 = arith.constant 608 : index
    %c0_21 = arith.constant 0 : index
    %53 = vector.load %arg5[%c608, %c0_21] : memref<1112x64xf32, #tpu.memory_space<vmem>>, vector<64x64xf32>
    %cst_22 = arith.constant dense<0.000000e+00> : vector<16x64xf32>
    %54 = tpu.matmul %52, %53, %cst_22 {dimension_numbers = #tpu.dot_dimension_numbers<[1], [0], [0], [1], [0, 0, 1, 1], [], []>} : vector<16x64xf32>, vector<64x64xf32>, vector<16x64xf32> -> vector<16x64xf32>
    %c432 = arith.constant 432 : index
    %c0_23 = arith.constant 0 : index
    %55 = vector.load %arg5[%c432, %c0_23] : memref<1112x64xf32, #tpu.memory_space<vmem>>, vector<1x64xf32>
    %56 = vector.broadcast %55 : vector<1x64xf32> to vector<16x64xf32>
    %57 = arith.addf %54, %56 : vector<16x64xf32>
    %58 = arith.addf %8, %57 : vector<16x64xf32>
    %cst_24 = arith.constant dense<0.000000e+00> : vector<16xf32>
    %59 = vector.multi_reduction <add>, %58, %cst_24 [1] : vector<16x64xf32> to vector<16xf32>
    %60 = vector.shape_cast %59 : vector<16xf32> to vector<16x1xf32>
    %cst_25 = arith.constant 6.400000e+01 : f32
    %61 = vector.broadcast %cst_25 : f32 to vector<16x1xf32>
    %62 = arith.divf %60, %61 : vector<16x1xf32>
    %63 = vector.broadcast %62 : vector<16x1xf32> to vector<16x64xf32>
    %64 = arith.subf %58, %63 : vector<16x64xf32>
    %65 = arith.mulf %64, %64 : vector<16x64xf32>
    %cst_26 = arith.constant dense<0.000000e+00> : vector<16xf32>
    %66 = vector.multi_reduction <add>, %65, %cst_26 [1] : vector<16x64xf32> to vector<16xf32>
    %67 = vector.shape_cast %66 : vector<16xf32> to vector<16x1xf32>
    %cst_27 = arith.constant 6.400000e+01 : f32
    %68 = vector.broadcast %cst_27 : f32 to vector<16x1xf32>
    %69 = arith.divf %67, %68 : vector<16x1xf32>
    %cst_28 = arith.constant 9.99999997E-7 : f32
    %70 = vector.broadcast %cst_28 : f32 to vector<16x1xf32>
    %71 = arith.addf %69, %70 : vector<16x1xf32>
    %72 = math.rsqrt %71 : vector<16x1xf32>
    %73 = vector.broadcast %72 : vector<16x1xf32> to vector<16x64xf32>
    %74 = arith.mulf %64, %73 : vector<16x64xf32>
    %c464 = arith.constant 464 : index
    %c0_29 = arith.constant 0 : index
    %75 = vector.load %arg5[%c464, %c0_29] : memref<1112x64xf32, #tpu.memory_space<vmem>>, vector<1x64xf32>
    %76 = vector.broadcast %75 : vector<1x64xf32> to vector<16x64xf32>
    %77 = arith.mulf %74, %76 : vector<16x64xf32>
    %c456 = arith.constant 456 : index
    %c0_30 = arith.constant 0 : index
    %78 = vector.load %arg5[%c456, %c0_30] : memref<1112x64xf32, #tpu.memory_space<vmem>>, vector<1x64xf32>
    %79 = vector.broadcast %78 : vector<1x64xf32> to vector<16x64xf32>
    %80 = arith.addf %77, %79 : vector<16x64xf32>
    %c80 = arith.constant 80 : index
    %c0_31 = arith.constant 0 : index
    %81 = vector.load %arg6[%c80, %c0_31] : memref<216x128xf32, #tpu.memory_space<vmem>>, vector<64x128xf32>
    %cst_32 = arith.constant dense<0.000000e+00> : vector<16x128xf32>
    %82 = tpu.matmul %80, %81, %cst_32 {dimension_numbers = #tpu.dot_dimension_numbers<[1], [0], [0], [1], [0, 0, 1, 1], [], []>} : vector<16x64xf32>, vector<64x128xf32>, vector<16x128xf32> -> vector<16x128xf32>
    %c72 = arith.constant 72 : index
    %c0_33 = arith.constant 0 : index
    %83 = vector.load %arg6[%c72, %c0_33] : memref<216x128xf32, #tpu.memory_space<vmem>>, vector<1x128xf32>
    %84 = vector.broadcast %83 : vector<1x128xf32> to vector<16x128xf32>
    %85 = arith.addf %82, %84 : vector<16x128xf32>
    %86 = arith.mulf %85, %85 : vector<16x128xf32>
    %87 = arith.mulf %85, %86 : vector<16x128xf32>
    %cst_34 = arith.constant 4.471500e-02 : f32
    %88 = vector.broadcast %cst_34 : f32 to vector<16x128xf32>
    %89 = arith.mulf %88, %87 : vector<16x128xf32>
    %90 = arith.addf %85, %89 : vector<16x128xf32>
    %cst_35 = arith.constant 0.797884583 : f32
    %91 = vector.broadcast %cst_35 : f32 to vector<16x128xf32>
    %92 = arith.mulf %91, %90 : vector<16x128xf32>
    %93 = math.tanh %92 : vector<16x128xf32>
    %cst_36 = arith.constant 1.000000e+00 : f32
    %94 = vector.broadcast %cst_36 : f32 to vector<16x128xf32>
    %95 = arith.addf %94, %93 : vector<16x128xf32>
    %cst_37 = arith.constant 5.000000e-01 : f32
    %96 = vector.broadcast %cst_37 : f32 to vector<16x128xf32>
    %97 = arith.mulf %96, %95 : vector<16x128xf32>
    %98 = arith.mulf %85, %97 : vector<16x128xf32>
    %c480 = arith.constant 480 : index
    %c0_38 = arith.constant 0 : index
    %99 = vector.load %arg5[%c480, %c0_38] : memref<1112x64xf32, #tpu.memory_space<vmem>>, vector<128x64xf32>
    %cst_39 = arith.constant dense<0.000000e+00> : vector<16x64xf32>
    %100 = tpu.matmul %98, %99, %cst_39 {dimension_numbers = #tpu.dot_dimension_numbers<[1], [0], [0], [1], [0, 0, 1, 1], [], []>} : vector<16x128xf32>, vector<128x64xf32>, vector<16x64xf32> -> vector<16x64xf32>
    %c472 = arith.constant 472 : index
    %c0_40 = arith.constant 0 : index
    %101 = vector.load %arg5[%c472, %c0_40] : memref<1112x64xf32, #tpu.memory_space<vmem>>, vector<1x64xf32>
    %102 = vector.broadcast %101 : vector<1x64xf32> to vector<16x64xf32>
    %103 = arith.addf %100, %102 : vector<16x64xf32>
    %104 = arith.addf %58, %103 : vector<16x64xf32>
    %c888 = arith.constant 888 : index
    %c0_41 = arith.constant 0 : index
    %105 = vector.load %arg5[%c888, %c0_41] : memref<1112x64xf32, #tpu.memory_space<vmem>>, vector<1x64xf32>
    %106 = vector.broadcast %105 : vector<1x64xf32> to vector<16x64xf32>
    %107 = arith.addf %104, %106 : vector<16x64xf32>
    %c416 = arith.constant 416 : index
    %c0_42 = arith.constant 0 : index
    %108 = vector.load %arg5[%c416, %c0_42] : memref<1112x64xf32, #tpu.memory_space<vmem>>, vector<16x64xf32>
    %c0_43 = arith.constant 0 : index
    %c0_44 = arith.constant 0 : index
    %c0_45 = arith.constant 0 : index
    %109 = vector.load %arg2[%c0_43, %c0_44, %c0_45] : memref<1x8x64xf32, #tpu.memory_space<vmem>>, vector<1x8x64xf32>
    %110 = vector.shape_cast %109 : vector<1x8x64xf32> to vector<8x64xf32>
    %c80_46 = arith.constant 80 : index
    %c0_47 = arith.constant 0 : index
    %111 = vector.load %arg7[%c80_46, %c0_47] : memref<144x192xf32, #tpu.memory_space<vmem>>, vector<64x192xf32>
    %cst_48 = arith.constant dense<0.000000e+00> : vector<8x192xf32>
    %112 = tpu.matmul %110, %111, %cst_48 {dimension_numbers = #tpu.dot_dimension_numbers<[1], [0], [0], [1], [0, 0, 1, 1], [], []>} : vector<8x64xf32>, vector<64x192xf32>, vector<8x192xf32> -> vector<8x192xf32>
    %c72_49 = arith.constant 72 : index
    %c0_50 = arith.constant 0 : index
    %113 = vector.load %arg7[%c72_49, %c0_50] : memref<144x192xf32, #tpu.memory_space<vmem>>, vector<1x192xf32>
    %114 = vector.broadcast %113 : vector<1x192xf32> to vector<8x192xf32>
    %115 = arith.addf %112, %114 : vector<8x192xf32>
    %116 = vector.extract_strided_slice %115 {offsets = [0, 0], sizes = [8, 64], strides = [1, 1]} : vector<8x192xf32> to vector<8x64xf32>
    %117 = vector.extract_strided_slice %115 {offsets = [0, 64], sizes = [8, 64], strides = [1, 1]} : vector<8x192xf32> to vector<8x64xf32>
    %118 = vector.extract_strided_slice %115 {offsets = [0, 128], sizes = [8, 64], strides = [1, 1]} : vector<8x192xf32> to vector<8x64xf32>
    %cst_51 = arith.constant dense<0.000000e+00> : vector<8x8xf32>
    %119 = tpu.matmul %116, %117, %cst_51 {dimension_numbers = #tpu.dot_dimension_numbers<[1], [1], [0], [0], [0, 0, 1, 0], [], []>} : vector<8x64xf32>, vector<8x64xf32>, vector<8x8xf32> -> vector<8x8xf32>
    %cst_52 = arith.constant 1.250000e-01 : f32
    %120 = vector.broadcast %cst_52 : f32 to vector<8x8xf32>
    %121 = arith.mulf %119, %120 : vector<8x8xf32>
    %cst_53 = arith.constant dense<0xFF800000> : vector<8xf32>
    %122 = vector.multi_reduction <maximumf>, %121, %cst_53 [1] : vector<8x8xf32> to vector<8xf32>
    %123 = vector.shape_cast %122 : vector<8xf32> to vector<8x1xf32>
    %124 = vector.broadcast %123 : vector<8x1xf32> to vector<8x8xf32>
    %125 = arith.subf %121, %124 : vector<8x8xf32>
    %126 = math.exp %125 : vector<8x8xf32>
    %cst_54 = arith.constant dense<0.000000e+00> : vector<8xf32>
    %127 = vector.multi_reduction <add>, %126, %cst_54 [1] : vector<8x8xf32> to vector<8xf32>
    %128 = vector.shape_cast %127 : vector<8xf32> to vector<8x1xf32>
    %129 = tpu.reciprocal %128 {approx = true} : vector<8x1xf32> -> vector<8x1xf32>
    %130 = vector.broadcast %129 : vector<8x1xf32> to vector<8x8xf32>
    %131 = arith.mulf %126, %130 : vector<8x8xf32>
    %cst_55 = arith.constant dense<0.000000e+00> : vector<8x64xf32>
    %132 = tpu.matmul %131, %118, %cst_55 {dimension_numbers = #tpu.dot_dimension_numbers<[1], [0], [0], [1], [0, 0, 1, 1], [], []>} : vector<8x8xf32>, vector<8x64xf32>, vector<8x64xf32> -> vector<8x64xf32>
    %133 = arith.addf %110, %132 : vector<8x64xf32>
    %cst_56 = arith.constant dense<0.000000e+00> : vector<8xf32>
    %134 = vector.multi_reduction <add>, %133, %cst_56 [1] : vector<8x64xf32> to vector<8xf32>
    %135 = vector.shape_cast %134 : vector<8xf32> to vector<8x1xf32>
    %cst_57 = arith.constant 6.400000e+01 : f32
    %136 = vector.broadcast %cst_57 : f32 to vector<8x1xf32>
    %137 = arith.divf %135, %136 : vector<8x1xf32>
    %138 = vector.broadcast %137 : vector<8x1xf32> to vector<8x64xf32>
    %139 = arith.subf %133, %138 : vector<8x64xf32>
    %140 = arith.mulf %139, %139 : vector<8x64xf32>
    %cst_58 = arith.constant dense<0.000000e+00> : vector<8xf32>
    %141 = vector.multi_reduction <add>, %140, %cst_58 [1] : vector<8x64xf32> to vector<8xf32>
    %142 = vector.shape_cast %141 : vector<8xf32> to vector<8x1xf32>
    %cst_59 = arith.constant 6.400000e+01 : f32
    %143 = vector.broadcast %cst_59 : f32 to vector<8x1xf32>
    %144 = arith.divf %142, %143 : vector<8x1xf32>
    %cst_60 = arith.constant 9.99999997E-7 : f32
    %145 = vector.broadcast %cst_60 : f32 to vector<8x1xf32>
    %146 = arith.addf %144, %145 : vector<8x1xf32>
    %147 = math.rsqrt %146 : vector<8x1xf32>
    %148 = vector.broadcast %147 : vector<8x1xf32> to vector<8x64xf32>
    %149 = arith.mulf %139, %148 : vector<8x64xf32>
    %c224 = arith.constant 224 : index
    %c0_61 = arith.constant 0 : index
    %150 = vector.load %arg5[%c224, %c0_61] : memref<1112x64xf32, #tpu.memory_space<vmem>>, vector<1x64xf32>
    %151 = vector.broadcast %150 : vector<1x64xf32> to vector<8x64xf32>
    %152 = arith.mulf %149, %151 : vector<8x64xf32>
    %c216 = arith.constant 216 : index
    %c0_62 = arith.constant 0 : index
    %153 = vector.load %arg5[%c216, %c0_62] : memref<1112x64xf32, #tpu.memory_space<vmem>>, vector<1x64xf32>
    %154 = vector.broadcast %153 : vector<1x64xf32> to vector<8x64xf32>
    %155 = arith.addf %152, %154 : vector<8x64xf32>
    %c88 = arith.constant 88 : index
    %c0_63 = arith.constant 0 : index
    %156 = vector.load %arg5[%c88, %c0_63] : memref<1112x64xf32, #tpu.memory_space<vmem>>, vector<64x64xf32>
    %cst_64 = arith.constant dense<0.000000e+00> : vector<8x64xf32>
    %157 = tpu.matmul %155, %156, %cst_64 {dimension_numbers = #tpu.dot_dimension_numbers<[1], [0], [0], [1], [0, 0, 1, 1], [], []>} : vector<8x64xf32>, vector<64x64xf32>, vector<8x64xf32> -> vector<8x64xf32>
    %c8_65 = arith.constant 8 : index
    %c0_66 = arith.constant 0 : index
    %158 = vector.load %arg5[%c8_65, %c0_66] : memref<1112x64xf32, #tpu.memory_space<vmem>>, vector<1x64xf32>
    %159 = vector.broadcast %158 : vector<1x64xf32> to vector<8x64xf32>
    %160 = arith.addf %157, %159 : vector<8x64xf32>
    %161 = arith.addf %107, %108 : vector<16x64xf32>
    %c24 = arith.constant 24 : index
    %c0_67 = arith.constant 0 : index
    %162 = vector.load %arg5[%c24, %c0_67] : memref<1112x64xf32, #tpu.memory_space<vmem>>, vector<64x64xf32>
    %cst_68 = arith.constant dense<0.000000e+00> : vector<16x64xf32>
    %163 = tpu.matmul %161, %162, %cst_68 {dimension_numbers = #tpu.dot_dimension_numbers<[1], [0], [0], [1], [0, 0, 1, 1], [], []>} : vector<16x64xf32>, vector<64x64xf32>, vector<16x64xf32> -> vector<16x64xf32>
    %c0_69 = arith.constant 0 : index
    %c0_70 = arith.constant 0 : index
    %164 = vector.load %arg5[%c0_69, %c0_70] : memref<1112x64xf32, #tpu.memory_space<vmem>>, vector<1x64xf32>
    %165 = vector.broadcast %164 : vector<1x64xf32> to vector<16x64xf32>
    %166 = arith.addf %163, %165 : vector<16x64xf32>
    %c152 = arith.constant 152 : index
    %c0_71 = arith.constant 0 : index
    %167 = vector.load %arg5[%c152, %c0_71] : memref<1112x64xf32, #tpu.memory_space<vmem>>, vector<64x64xf32>
    %cst_72 = arith.constant dense<0.000000e+00> : vector<16x64xf32>
    %168 = tpu.matmul %107, %167, %cst_72 {dimension_numbers = #tpu.dot_dimension_numbers<[1], [0], [0], [1], [0, 0, 1, 1], [], []>} : vector<16x64xf32>, vector<64x64xf32>, vector<16x64xf32> -> vector<16x64xf32>
    %c16 = arith.constant 16 : index
    %c0_73 = arith.constant 0 : index
    %169 = vector.load %arg5[%c16, %c0_73] : memref<1112x64xf32, #tpu.memory_space<vmem>>, vector<1x64xf32>
    %170 = vector.broadcast %169 : vector<1x64xf32> to vector<16x64xf32>
    %171 = arith.addf %168, %170 : vector<16x64xf32>
    %cst_74 = arith.constant dense<0.000000e+00> : vector<8x16xf32>
    %172 = tpu.matmul %160, %166, %cst_74 {dimension_numbers = #tpu.dot_dimension_numbers<[1], [1], [0], [0], [0, 0, 1, 0], [], []>} : vector<8x64xf32>, vector<16x64xf32>, vector<8x16xf32> -> vector<8x16xf32>
    %cst_75 = arith.constant 1.250000e-01 : f32
    %173 = vector.broadcast %cst_75 : f32 to vector<8x16xf32>
    %174 = arith.mulf %172, %173 : vector<8x16xf32>
    %cst_76 = arith.constant dense<0xFF800000> : vector<8xf32>
    %175 = vector.multi_reduction <maximumf>, %174, %cst_76 [1] : vector<8x16xf32> to vector<8xf32>
    %176 = vector.shape_cast %175 : vector<8xf32> to vector<8x1xf32>
    %177 = vector.broadcast %176 : vector<8x1xf32> to vector<8x16xf32>
    %178 = arith.subf %174, %177 : vector<8x16xf32>
    %179 = math.exp %178 : vector<8x16xf32>
    %cst_77 = arith.constant dense<0.000000e+00> : vector<8xf32>
    %180 = vector.multi_reduction <add>, %179, %cst_77 [1] : vector<8x16xf32> to vector<8xf32>
    %181 = vector.shape_cast %180 : vector<8xf32> to vector<8x1xf32>
    %182 = tpu.reciprocal %181 {approx = true} : vector<8x1xf32> -> vector<8x1xf32>
    %183 = vector.broadcast %182 : vector<8x1xf32> to vector<8x16xf32>
    %184 = arith.mulf %179, %183 : vector<8x16xf32>
    %cst_78 = arith.constant dense<0.000000e+00> : vector<8x64xf32>
    %185 = tpu.matmul %184, %171, %cst_78 {dimension_numbers = #tpu.dot_dimension_numbers<[1], [0], [0], [1], [0, 0, 1, 1], [], []>} : vector<8x16xf32>, vector<16x64xf32>, vector<8x64xf32> -> vector<8x64xf32>
    %186 = arith.addf %155, %185 : vector<8x64xf32>
    %cst_79 = arith.constant dense<0.000000e+00> : vector<8xf32>
    %187 = vector.multi_reduction <add>, %186, %cst_79 [1] : vector<8x64xf32> to vector<8xf32>
    %188 = vector.shape_cast %187 : vector<8xf32> to vector<8x1xf32>
    %cst_80 = arith.constant 6.400000e+01 : f32
    %189 = vector.broadcast %cst_80 : f32 to vector<8x1xf32>
    %190 = arith.divf %188, %189 : vector<8x1xf32>
    %191 = vector.broadcast %190 : vector<8x1xf32> to vector<8x64xf32>
    %192 = arith.subf %186, %191 : vector<8x64xf32>
    %193 = arith.mulf %192, %192 : vector<8x64xf32>
    %cst_81 = arith.constant dense<0.000000e+00> : vector<8xf32>
    %194 = vector.multi_reduction <add>, %193, %cst_81 [1] : vector<8x64xf32> to vector<8xf32>
    %195 = vector.shape_cast %194 : vector<8xf32> to vector<8x1xf32>
    %cst_82 = arith.constant 6.400000e+01 : f32
    %196 = vector.broadcast %cst_82 : f32 to vector<8x1xf32>
    %197 = arith.divf %195, %196 : vector<8x1xf32>
    %cst_83 = arith.constant 9.99999997E-7 : f32
    %198 = vector.broadcast %cst_83 : f32 to vector<8x1xf32>
    %199 = arith.addf %197, %198 : vector<8x1xf32>
    %200 = math.rsqrt %199 : vector<8x1xf32>
    %201 = vector.broadcast %200 : vector<8x1xf32> to vector<8x64xf32>
    %202 = arith.mulf %192, %201 : vector<8x64xf32>
    %c240 = arith.constant 240 : index
    %c0_84 = arith.constant 0 : index
    %203 = vector.load %arg5[%c240, %c0_84] : memref<1112x64xf32, #tpu.memory_space<vmem>>, vector<1x64xf32>
    %204 = vector.broadcast %203 : vector<1x64xf32> to vector<8x64xf32>
    %205 = arith.mulf %202, %204 : vector<8x64xf32>
    %c232 = arith.constant 232 : index
    %c0_85 = arith.constant 0 : index
    %206 = vector.load %arg5[%c232, %c0_85] : memref<1112x64xf32, #tpu.memory_space<vmem>>, vector<1x64xf32>
    %207 = vector.broadcast %206 : vector<1x64xf32> to vector<8x64xf32>
    %208 = arith.addf %205, %207 : vector<8x64xf32>
    %c8_86 = arith.constant 8 : index
    %c0_87 = arith.constant 0 : index
    %209 = vector.load %arg6[%c8_86, %c0_87] : memref<216x128xf32, #tpu.memory_space<vmem>>, vector<64x128xf32>
    %cst_88 = arith.constant dense<0.000000e+00> : vector<8x128xf32>
    %210 = tpu.matmul %208, %209, %cst_88 {dimension_numbers = #tpu.dot_dimension_numbers<[1], [0], [0], [1], [0, 0, 1, 1], [], []>} : vector<8x64xf32>, vector<64x128xf32>, vector<8x128xf32> -> vector<8x128xf32>
    %c0_89 = arith.constant 0 : index
    %c0_90 = arith.constant 0 : index
    %211 = vector.load %arg6[%c0_89, %c0_90] : memref<216x128xf32, #tpu.memory_space<vmem>>, vector<1x128xf32>
    %212 = vector.broadcast %211 : vector<1x128xf32> to vector<8x128xf32>
    %213 = arith.addf %210, %212 : vector<8x128xf32>
    %cst_91 = arith.constant 0.000000e+00 : f32
    %214 = vector.broadcast %cst_91 : f32 to vector<8x128xf32>
    %215 = arith.maximumf %213, %214 : vector<8x128xf32>
    %c288 = arith.constant 288 : index
    %c0_92 = arith.constant 0 : index
    %216 = vector.load %arg5[%c288, %c0_92] : memref<1112x64xf32, #tpu.memory_space<vmem>>, vector<128x64xf32>
    %cst_93 = arith.constant dense<0.000000e+00> : vector<8x64xf32>
    %217 = tpu.matmul %215, %216, %cst_93 {dimension_numbers = #tpu.dot_dimension_numbers<[1], [0], [0], [1], [0, 0, 1, 1], [], []>} : vector<8x128xf32>, vector<128x64xf32>, vector<8x64xf32> -> vector<8x64xf32>
    %c280 = arith.constant 280 : index
    %c0_94 = arith.constant 0 : index
    %218 = vector.load %arg5[%c280, %c0_94] : memref<1112x64xf32, #tpu.memory_space<vmem>>, vector<1x64xf32>
    %219 = vector.broadcast %218 : vector<1x64xf32> to vector<8x64xf32>
    %220 = arith.addf %217, %219 : vector<8x64xf32>
    %221 = arith.addf %208, %220 : vector<8x64xf32>
    %cst_95 = arith.constant dense<0.000000e+00> : vector<8xf32>
    %222 = vector.multi_reduction <add>, %221, %cst_95 [1] : vector<8x64xf32> to vector<8xf32>
    %223 = vector.shape_cast %222 : vector<8xf32> to vector<8x1xf32>
    %cst_96 = arith.constant 6.400000e+01 : f32
    %224 = vector.broadcast %cst_96 : f32 to vector<8x1xf32>
    %225 = arith.divf %223, %224 : vector<8x1xf32>
    %226 = vector.broadcast %225 : vector<8x1xf32> to vector<8x64xf32>
    %227 = arith.subf %221, %226 : vector<8x64xf32>
    %228 = arith.mulf %227, %227 : vector<8x64xf32>
    %cst_97 = arith.constant dense<0.000000e+00> : vector<8xf32>
    %229 = vector.multi_reduction <add>, %228, %cst_97 [1] : vector<8x64xf32> to vector<8xf32>
    %230 = vector.shape_cast %229 : vector<8xf32> to vector<8x1xf32>
    %cst_98 = arith.constant 6.400000e+01 : f32
    %231 = vector.broadcast %cst_98 : f32 to vector<8x1xf32>
    %232 = arith.divf %230, %231 : vector<8x1xf32>
    %cst_99 = arith.constant 9.99999997E-7 : f32
    %233 = vector.broadcast %cst_99 : f32 to vector<8x1xf32>
    %234 = arith.addf %232, %233 : vector<8x1xf32>
    %235 = math.rsqrt %234 : vector<8x1xf32>
    %236 = vector.broadcast %235 : vector<8x1xf32> to vector<8x64xf32>
    %237 = arith.mulf %227, %236 : vector<8x64xf32>
    %c256 = arith.constant 256 : index
    %c0_100 = arith.constant 0 : index
    %238 = vector.load %arg5[%c256, %c0_100] : memref<1112x64xf32, #tpu.memory_space<vmem>>, vector<1x64xf32>
    %239 = vector.broadcast %238 : vector<1x64xf32> to vector<8x64xf32>
    %240 = arith.mulf %237, %239 : vector<8x64xf32>
    %c248 = arith.constant 248 : index
    %c0_101 = arith.constant 0 : index
    %241 = vector.load %arg5[%c248, %c0_101] : memref<1112x64xf32, #tpu.memory_space<vmem>>, vector<1x64xf32>
    %242 = vector.broadcast %241 : vector<1x64xf32> to vector<8x64xf32>
    %243 = arith.addf %240, %242 : vector<8x64xf32>
    %244 = arith.addf %107, %108 : vector<16x64xf32>
    %c752 = arith.constant 752 : index
    %c0_102 = arith.constant 0 : index
    %245 = vector.load %arg5[%c752, %c0_102] : memref<1112x64xf32, #tpu.memory_space<vmem>>, vector<64x64xf32>
    %cst_103 = arith.constant dense<0.000000e+00> : vector<16x64xf32>
    %246 = tpu.matmul %244, %245, %cst_103 {dimension_numbers = #tpu.dot_dimension_numbers<[1], [0], [0], [1], [0, 0, 1, 1], [], []>} : vector<16x64xf32>, vector<64x64xf32>, vector<16x64xf32> -> vector<16x64xf32>
    %c744 = arith.constant 744 : index
    %c0_104 = arith.constant 0 : index
    %247 = vector.load %arg5[%c744, %c0_104] : memref<1112x64xf32, #tpu.memory_space<vmem>>, vector<1x64xf32>
    %248 = vector.broadcast %247 : vector<1x64xf32> to vector<16x64xf32>
    %249 = arith.addf %246, %248 : vector<16x64xf32>
    %c152_105 = arith.constant 152 : index
    %c0_106 = arith.constant 0 : index
    %250 = vector.load %arg6[%c152_105, %c0_106] : memref<216x128xf32, #tpu.memory_space<vmem>>, vector<64x128xf32>
    %cst_107 = arith.constant dense<0.000000e+00> : vector<8x128xf32>
    %251 = tpu.matmul %243, %250, %cst_107 {dimension_numbers = #tpu.dot_dimension_numbers<[1], [0], [0], [1], [0, 0, 1, 1], [], []>} : vector<8x64xf32>, vector<64x128xf32>, vector<8x128xf32> -> vector<8x128xf32>
    %c144 = arith.constant 144 : index
    %c0_108 = arith.constant 0 : index
    %252 = vector.load %arg6[%c144, %c0_108] : memref<216x128xf32, #tpu.memory_space<vmem>>, vector<1x128xf32>
    %253 = vector.broadcast %252 : vector<1x128xf32> to vector<8x128xf32>
    %254 = arith.addf %251, %253 : vector<8x128xf32>
    %255 = vector.extract_strided_slice %254 {offsets = [0, 0], sizes = [8, 64], strides = [1, 1]} : vector<8x128xf32> to vector<8x64xf32>
    %256 = vector.extract_strided_slice %254 {offsets = [0, 64], sizes = [8, 64], strides = [1, 1]} : vector<8x128xf32> to vector<8x64xf32>
    %cst_109 = arith.constant dense<0.000000e+00> : vector<16x8xf32>
    %257 = tpu.matmul %249, %255, %cst_109 {dimension_numbers = #tpu.dot_dimension_numbers<[1], [1], [0], [0], [0, 0, 1, 0], [], []>} : vector<16x64xf32>, vector<8x64xf32>, vector<16x8xf32> -> vector<16x8xf32>
    %cst_110 = arith.constant 1.250000e-01 : f32
    %258 = vector.broadcast %cst_110 : f32 to vector<16x8xf32>
    %259 = arith.mulf %257, %258 : vector<16x8xf32>
    %cst_111 = arith.constant dense<0xFF800000> : vector<16xf32>
    %260 = vector.multi_reduction <maximumf>, %259, %cst_111 [1] : vector<16x8xf32> to vector<16xf32>
    %261 = vector.shape_cast %260 : vector<16xf32> to vector<16x1xf32>
    %262 = vector.broadcast %261 : vector<16x1xf32> to vector<16x8xf32>
    %263 = arith.subf %259, %262 : vector<16x8xf32>
    %264 = math.exp %263 : vector<16x8xf32>
    %cst_112 = arith.constant dense<0.000000e+00> : vector<16xf32>
    %265 = vector.multi_reduction <add>, %264, %cst_112 [1] : vector<16x8xf32> to vector<16xf32>
    %266 = vector.shape_cast %265 : vector<16xf32> to vector<16x1xf32>
    %267 = tpu.reciprocal %266 {approx = true} : vector<16x1xf32> -> vector<16x1xf32>
    %268 = vector.broadcast %267 : vector<16x1xf32> to vector<16x8xf32>
    %269 = arith.mulf %264, %268 : vector<16x8xf32>
    %cst_113 = arith.constant dense<0.000000e+00> : vector<16x64xf32>
    %270 = tpu.matmul %269, %256, %cst_113 {dimension_numbers = #tpu.dot_dimension_numbers<[1], [0], [0], [1], [0, 0, 1, 1], [], []>} : vector<16x8xf32>, vector<8x64xf32>, vector<16x64xf32> -> vector<16x64xf32>
    %271 = arith.addf %107, %270 : vector<16x64xf32>
    %cst_114 = arith.constant dense<0.000000e+00> : vector<16xf32>
    %272 = vector.multi_reduction <add>, %271, %cst_114 [1] : vector<16x64xf32> to vector<16xf32>
    %273 = vector.shape_cast %272 : vector<16xf32> to vector<16x1xf32>
    %cst_115 = arith.constant 6.400000e+01 : f32
    %274 = vector.broadcast %cst_115 : f32 to vector<16x1xf32>
    %275 = arith.divf %273, %274 : vector<16x1xf32>
    %276 = vector.broadcast %275 : vector<16x1xf32> to vector<16x64xf32>
    %277 = arith.subf %271, %276 : vector<16x64xf32>
    %278 = arith.mulf %277, %277 : vector<16x64xf32>
    %cst_116 = arith.constant dense<0.000000e+00> : vector<16xf32>
    %279 = vector.multi_reduction <add>, %278, %cst_116 [1] : vector<16x64xf32> to vector<16xf32>
    %280 = vector.shape_cast %279 : vector<16xf32> to vector<16x1xf32>
    %cst_117 = arith.constant 6.400000e+01 : f32
    %281 = vector.broadcast %cst_117 : f32 to vector<16x1xf32>
    %282 = arith.divf %280, %281 : vector<16x1xf32>
    %cst_118 = arith.constant 9.99999997E-7 : f32
    %283 = vector.broadcast %cst_118 : f32 to vector<16x1xf32>
    %284 = arith.addf %282, %283 : vector<16x1xf32>
    %285 = math.rsqrt %284 : vector<16x1xf32>
    %286 = vector.broadcast %285 : vector<16x1xf32> to vector<16x64xf32>
    %287 = arith.mulf %277, %286 : vector<16x64xf32>
    %c272 = arith.constant 272 : index
    %c0_119 = arith.constant 0 : index
    %288 = vector.load %arg5[%c272, %c0_119] : memref<1112x64xf32, #tpu.memory_space<vmem>>, vector<1x64xf32>
    %289 = vector.broadcast %288 : vector<1x64xf32> to vector<16x64xf32>
    %290 = arith.mulf %287, %289 : vector<16x64xf32>
    %c264 = arith.constant 264 : index
    %c0_120 = arith.constant 0 : index
    %291 = vector.load %arg5[%c264, %c0_120] : memref<1112x64xf32, #tpu.memory_space<vmem>>, vector<1x64xf32>
    %292 = vector.broadcast %291 : vector<1x64xf32> to vector<16x64xf32>
    %293 = arith.addf %290, %292 : vector<16x64xf32>
    %294 = vector.extract_strided_slice %243 {offsets = [0, 0], sizes = [1, 64], strides = [1, 1]} : vector<8x64xf32> to vector<1x64xf32>
    %295 = vector.extract_strided_slice %243 {offsets = [1, 0], sizes = [4, 64], strides = [1, 1]} : vector<8x64xf32> to vector<4x64xf32>
    %c80_121 = arith.constant 80 : index
    %c0_122 = arith.constant 0 : index
    %296 = vector.load %arg4[%c80_121, %c0_122] : memref<144x32xf32, #tpu.memory_space<vmem>>, vector<64x32xf32>
    %cst_123 = arith.constant dense<0.000000e+00> : vector<16x32xf32>
    %297 = tpu.matmul %293, %296, %cst_123 {dimension_numbers = #tpu.dot_dimension_numbers<[1], [0], [0], [1], [0, 0, 1, 1], [], []>} : vector<16x64xf32>, vector<64x32xf32>, vector<16x32xf32> -> vector<16x32xf32>
    %c72_124 = arith.constant 72 : index
    %c0_125 = arith.constant 0 : index
    %298 = vector.load %arg4[%c72_124, %c0_125] : memref<144x32xf32, #tpu.memory_space<vmem>>, vector<1x32xf32>
    %299 = vector.broadcast %298 : vector<1x32xf32> to vector<16x32xf32>
    %300 = arith.addf %297, %299 : vector<16x32xf32>
    %301 = arith.mulf %300, %300 : vector<16x32xf32>
    %302 = arith.mulf %300, %301 : vector<16x32xf32>
    %cst_126 = arith.constant 4.471500e-02 : f32
    %303 = vector.broadcast %cst_126 : f32 to vector<16x32xf32>
    %304 = arith.mulf %303, %302 : vector<16x32xf32>
    %305 = arith.addf %300, %304 : vector<16x32xf32>
    %cst_127 = arith.constant 0.797884583 : f32
    %306 = vector.broadcast %cst_127 : f32 to vector<16x32xf32>
    %307 = arith.mulf %306, %305 : vector<16x32xf32>
    %308 = math.tanh %307 : vector<16x32xf32>
    %cst_128 = arith.constant 1.000000e+00 : f32
    %309 = vector.broadcast %cst_128 : f32 to vector<16x32xf32>
    %310 = arith.addf %309, %308 : vector<16x32xf32>
    %cst_129 = arith.constant 5.000000e-01 : f32
    %311 = vector.broadcast %cst_129 : f32 to vector<16x32xf32>
    %312 = arith.mulf %311, %310 : vector<16x32xf32>
    %313 = arith.mulf %300, %312 : vector<16x32xf32>
    %c680 = arith.constant 680 : index
    %c0_130 = arith.constant 0 : index
    %314 = vector.load %arg5[%c680, %c0_130] : memref<1112x64xf32, #tpu.memory_space<vmem>>, vector<64x64xf32>
    %cst_131 = arith.constant dense<0.000000e+00> : vector<4x64xf32>
    %315 = tpu.matmul %295, %314, %cst_131 {dimension_numbers = #tpu.dot_dimension_numbers<[1], [0], [0], [1], [0, 0, 1, 1], [], []>} : vector<4x64xf32>, vector<64x64xf32>, vector<4x64xf32> -> vector<4x64xf32>
    %c672 = arith.constant 672 : index
    %c0_132 = arith.constant 0 : index
    %316 = vector.load %arg5[%c672, %c0_132] : memref<1112x64xf32, #tpu.memory_space<vmem>>, vector<1x64xf32>
    %317 = vector.broadcast %316 : vector<1x64xf32> to vector<4x64xf32>
    %318 = arith.addf %315, %317 : vector<4x64xf32>
    %cst_133 = arith.constant 0.000000e+00 : f32
    %319 = vector.broadcast %cst_133 : f32 to vector<4x64xf32>
    %320 = arith.maximumf %318, %319 : vector<4x64xf32>
    %c8_134 = arith.constant 8 : index
    %c0_135 = arith.constant 0 : index
    %321 = vector.load %arg4[%c8_134, %c0_135] : memref<144x32xf32, #tpu.memory_space<vmem>>, vector<64x32xf32>
    %cst_136 = arith.constant dense<0.000000e+00> : vector<4x32xf32>
    %322 = tpu.matmul %320, %321, %cst_136 {dimension_numbers = #tpu.dot_dimension_numbers<[1], [0], [0], [1], [0, 0, 1, 1], [], []>} : vector<4x64xf32>, vector<64x32xf32>, vector<4x32xf32> -> vector<4x32xf32>
    %c0_137 = arith.constant 0 : index
    %c0_138 = arith.constant 0 : index
    %323 = vector.load %arg4[%c0_137, %c0_138] : memref<144x32xf32, #tpu.memory_space<vmem>>, vector<1x32xf32>
    %324 = vector.broadcast %323 : vector<1x32xf32> to vector<4x32xf32>
    %325 = arith.addf %322, %324 : vector<4x32xf32>
    %cst_139 = arith.constant dense<0.000000e+00> : vector<4x16xf32>
    %326 = tpu.matmul %325, %313, %cst_139 {dimension_numbers = #tpu.dot_dimension_numbers<[1], [1], [0], [0], [0, 0, 1, 0], [], []>} : vector<4x32xf32>, vector<16x32xf32>, vector<4x16xf32> -> vector<4x16xf32>
    %c0_140 = arith.constant 0 : index
    %c0_141 = arith.constant 0 : index
    %c0_142 = arith.constant 0 : index
    %327 = vector.load %arg8[%c0_140, %c0_141, %c0_142] : memref<1x4x16xf32, #tpu.memory_space<vmem>>, vector<1x4x16xf32>
    %328 = vector.shape_cast %327 : vector<1x4x16xf32> to vector<4x16xf32>
    %329 = vector.shape_cast %326 : vector<4x16xf32> to vector<1x4x16xf32>
    tpu.vector_store %arg8[%c0_140, %c0_141, %c0_142], %329 {strides = array<i32>} : memref<1x4x16xf32, #tpu.memory_space<vmem>>, vector<1x4x16xf32>,
    %c824 = arith.constant 824 : index
    %c0_143 = arith.constant 0 : index
    %330 = vector.load %arg5[%c824, %c0_143] : memref<1112x64xf32, #tpu.memory_space<vmem>>, vector<64x64xf32>
    %cst_144 = arith.constant dense<0.000000e+00> : vector<1x64xf32>
    %331 = tpu.matmul %294, %330, %cst_144 {dimension_numbers = #tpu.dot_dimension_numbers<[1], [0], [0], [1], [0, 0, 1, 1], [], []>} : vector<1x64xf32>, vector<64x64xf32>, vector<1x64xf32> -> vector<1x64xf32>
    %c816 = arith.constant 816 : index
    %c0_145 = arith.constant 0 : index
    %332 = vector.load %arg5[%c816, %c0_145] : memref<1112x64xf32, #tpu.memory_space<vmem>>, vector<1x64xf32>
    %333 = arith.addf %331, %332 : vector<1x64xf32>
    %cst_146 = arith.constant 0.000000e+00 : f32
    %334 = vector.broadcast %cst_146 : f32 to vector<1x64xf32>
    %335 = arith.maximumf %333, %334 : vector<1x64xf32>
    %c8_147 = arith.constant 8 : index
    %c0_148 = arith.constant 0 : index
    %336 = vector.load %arg3[%c8_147, %c0_148] : memref<72x4xf32, #tpu.memory_space<vmem>>, vector<64x4xf32>
    %cst_149 = arith.constant dense<0.000000e+00> : vector<1x4xf32>
    %337 = tpu.matmul %335, %336, %cst_149 {dimension_numbers = #tpu.dot_dimension_numbers<[1], [0], [0], [1], [0, 0, 1, 1], [], []>} : vector<1x64xf32>, vector<64x4xf32>, vector<1x4xf32> -> vector<1x4xf32>
    %c0_150 = arith.constant 0 : index
    %c0_151 = arith.constant 0 : index
    %338 = vector.load %arg3[%c0_150, %c0_151] : memref<72x4xf32, #tpu.memory_space<vmem>>, vector<1x4xf32>
    %339 = arith.addf %337, %338 : vector<1x4xf32>
    %c0_152 = arith.constant 0 : index
    %c0_153 = arith.constant 0 : index
    %c0_154 = arith.constant 0 : index
    %340 = vector.load %arg9[%c0_152, %c0_153, %c0_154] : memref<1x1x4xf32, #tpu.memory_space<vmem>>, vector<1x1x4xf32>
    %341 = vector.shape_cast %340 : vector<1x1x4xf32> to vector<1x4xf32>
    %342 = vector.shape_cast %339 : vector<1x4xf32> to vector<1x1x4xf32>
    tpu.vector_store %arg9[%c0_152, %c0_153, %c0_154], %342 {strides = array<i32>} : memref<1x1x4xf32, #tpu.memory_space<vmem>>, vector<1x1x4xf32>,
    return
  }
  func.func @transform_0(%arg0: i32) -> (i32, i32, i32) {
    %c0_i32 = arith.constant 0 : i32
    %c0_i32_0 = arith.constant 0 : i32
    %c0_i32_1 = arith.constant 0 : i32
    return %arg0, %c0_i32, %c0_i32_0 : i32, i32, i32
  }
  func.func @transform_1(%arg0: i32) -> (i32, i32, i32) {
    %c0_i32 = arith.constant 0 : i32
    %c0_i32_0 = arith.constant 0 : i32
    %c0_i32_1 = arith.constant 0 : i32
    return %arg0, %c0_i32, %c0_i32_0 : i32, i32, i32
  }
  func.func @transform_2(%arg0: i32) -> (i32, i32) {
    %c0_i32 = arith.constant 0 : i32
    %c0_i32_0 = arith.constant 0 : i32
    %c0_i32_1 = arith.constant 0 : i32
    return %c0_i32, %c0_i32_0 : i32, i32
  }
  func.func @transform_3(%arg0: i32) -> (i32, i32) {
    %c0_i32 = arith.constant 0 : i32
    %c0_i32_0 = arith.constant 0 : i32
    %c0_i32_1 = arith.constant 0 : i32
    return %c0_i32, %c0_i32_0 : i32, i32
  }
  func.func @transform_4(%arg0: i32) -> (i32, i32) {
    %c0_i32 = arith.constant 0 : i32
    %c0_i32_0 = arith.constant 0 : i32
    %c0_i32_1 = arith.constant 0 : i32
    return %c0_i32, %c0_i32_0 : i32, i32
  }
  func.func @transform_5(%arg0: i32) -> (i32, i32) {
    %c0_i32 = arith.constant 0 : i32
    %c0_i32_0 = arith.constant 0 : i32
    %c0_i32_1 = arith.constant 0 : i32
    return %c0_i32, %c0_i32_0 : i32, i32
  }
  func.func @transform_6(%arg0: i32) -> (i32, i32) {
    %c0_i32 = arith.constant 0 : i32
    %c0_i32_0 = arith.constant 0 : i32
    %c0_i32_1 = arith.constant 0 : i32
    return %c0_i32, %c0_i32_0 : i32, i32
  }
  func.func @transform_7(%arg0: i32) -> (i32, i32, i32) {
    %c0_i32 = arith.constant 0 : i32
    %c0_i32_0 = arith.constant 0 : i32
    %c0_i32_1 = arith.constant 0 : i32
    return %arg0, %c0_i32, %c0_i32_0 : i32, i32, i32
  }
  func.func @transform_8(%arg0: i32) -> (i32, i32, i32) {
    %c0_i32 = arith.constant 0 : i32
    %c0_i32_0 = arith.constant 0 : i32
    %c0_i32_1 = arith.constant 0 : i32
    return %arg0, %c0_i32, %c0_i32_0 : i32, i32, i32
  }
}

</mosaic_0001>

<bundles_post_ra>
// kernel: forward_batched.1
= control target key start
LH: loop header
LB: loop body
LE: loop exit
PB: predicated region body
PF: predicated region fallthrough
CT: control target
= control target key end

     0   :  { %14 = vsyncpa [#allocation3], 0  ;;  %s5378_s0 = inlined_call_operand.vmem [shape: f32[2,16,192], index: 0, kind: input, shape index: {}]   ;;  %s5379_s1 = inlined_call_operand.vmem [shape: f32[2,8,64], index: 1, kind: input, shape index: {}]   ;;  %s5380_s2 = inlined_call_operand.vmem [shape: f32[72,4], index: 2, kind: input, shape index: {}]   ;;  %s5381_s3 = inlined_call_operand.vmem [shape: f32[144,32], index: 3, kind: input, shape index: {}]   ;;  %s5382_s4 = inlined_call_operand.vmem [shape: f32[1112,64], index: 4, kind: input, shape index: {}]   ;;  %s5383_s5 = inlined_call_operand.vmem [shape: f32[216,128], index: 5, kind: input, shape index: {}]   ;;  %s5384_s6 = inlined_call_operand.vmem [shape: f32[144,192], index: 6, kind: input, shape index: {}]   ;;  %s5385_s7 = inlined_call_operand.vmem [shape: f32[2,4,16], index: 7, kind: output, shape index: {0}]   ;;  %s5386_s8 = inlined_call_operand.hbm [shape: f32[2,1,4], index: 8, kind: output, shape index: {1}]  }
   0x1   :  { %16 = vsyncpa [#allocation3 + $0x1], 0  ;;  %s4344_s27 = smov 0   ;;  %s4346_s28 = smov 0  }
   0x2   :  { %s4348_s29 = smov 0   ;;  %s4350_s30 = smov 0  }
   0x3 LB: > { %s4365_s9 = sadd.s32 4294967295, %s4292_s30   ;;  %s3165_s10 = sadd.s32 4294967294, %s4292_s30   ;;  %s4292_s30 = sphi %s4350_s30, %s5394_s30   ;;  %s4288_s29 = sphi %s4348_s29, %s5393_s29   ;;  %s4284_s28 = sphi %s4346_s28, %s5392_s28   ;;  %s4280_s27 = sphi %s4344_s27, %s5391_s27  }
   0x4   : > { %s4369_s11 = sadd.s32 1, %s4292_s30   ;;  %s212_s12 = sadd.s32 1, %s4288_s29 }
   0x5   : > { %s209_s13 = ssub.s32 %s4292_s30, %s4369_s11  ;;  %p222_p0 = scmp.ne.s32.totalorder %s4288_s29, %s4284_s28 }
   0x6   : > { %p210_p1 = scmp.eq.s32.totalorder %s209_s13, 0  ;;  %p223_p2 = scmp.eq.s32.totalorder %s4365_s9, 1 }
   0x7   : > { %p228_p3 = scmp.ne.s32.totalorder %s4284_s28, %s4280_s27  ;;  %p229_p4 = scmp.eq.s32.totalorder %s3165_s10, 1 }
   0x8   : > { %s4380_s14 = scalar_select %p210_p1, %s4288_s29, %s212_s12  }
   0x9   : > { %p4382_p5 = por %p223_p2, %p222_p0  ;;  %p4386_p6 = por %p229_p4, %p228_p3 }
   0xa   : > { %p3168_p7 = scmp.ge.s32.totalorder %s4292_s30, 1  ;;  %p277_p8 = scmp.lt.s32.totalorder %s4292_s30, 3 }
   0xc   : > { %p278_p9 = pnand %p3168_p7, %p277_p8 }
   0xd   : > { %v335_v0 = vld [vmem:[%s5382_s4 + $0x388] sm:$0xff] (!%p278_p9)  ;;  %v336_v1 = vld [vmem:[%s5382_s4 + $0x390] sm:$0xff] (!%p278_p9)  ;;  %v337_v2 = vld [vmem:[%s5382_s4 + $0x398] sm:$0xff] (!%p278_p9)  ;;  %p318_p10 = scmp.lt.s32.totalorder (!%p278_p9), %s4365_s9, 1  ;;  %v4294_v3 = vmov (!%p278_p9), 0.0|0.0   ;;  %vm364_vm0 = vcmask (!%p278_p9), 523264  }
   0xe   : > { %281 = sbr.rel (%p278_p9) target bundleno = 7628 (0x1dcc), region = 48  ;;  %3807 = vmatprep.subr.bf16.mxu0 (!%p278_p9), %v4294_v3  ;;  %v3808_v4 = vpack.c.bf16 (!%p278_p9), %v336_v1, %v335_v0  ;;  %v338_v5 = vld [vmem:[%s5382_s4 + $0x3a0] sm:$0xff] (!%p278_p9)  ;;  %v339_v7 = vld [vmem:[%s5382_s4 + $0x3a8] sm:$0xff] (!%p278_p9)  ;;  %v340_v8 = vld [vmem:[%s5382_s4 + $0x3b0] sm:$0xff] (!%p278_p9)  ;;  %s4296_s19 = smov (!%p278_p9), 64   ;;  %vm693_vm2 = vcmask (!%p278_p9), 130048  }
   0xf   : > { %v3811_v6 = vpack.c.bf16 (!%p278_p9), %v338_v5, %v337_v2  ;;  %v3814_v9 = vpack.c.bf16 (!%p278_p9), %v340_v8, %v339_v7  ;;  %v341_v10 = vld [vmem:[%s5382_s4 + $0x3b8] sm:$0xff] (!%p278_p9)  ;;  %v342_v11 = vld [vmem:[%s5382_s4 + $0x3c0] sm:$0xff] (!%p278_p9)  ;;  %v343_v14 = vld [vmem:[%s5382_s4 + $0x3c8] sm:$0xff] (!%p278_p9)  ;;  %vm4297_vm3 = vmmov (!%p278_p9), 0   ;;  %vm1334_vm4 = vcmask (!%p278_p9), 64512  }
  0x10   : > { %3809 = vmatpush1.bf16.msra.mxu0 (!%p278_p9), %v3808_v4  ;;  %v3817_v13 = vpack.c.bf16 (!%p278_p9), %v342_v11, %v341_v10  ;;  %v344_v15 = vld [vmem:[%s5382_s4 + $0x3d0] sm:$0xff] (!%p278_p9)  ;;  %v345_v17 = vld [vmem:[%s5382_s4 + $0x3d8] sm:$0xff] (!%p278_p9)  ;;  %v346_v18 = vld [vmem:[%s5382_s4 + $0x3e0] sm:$0xff] (!%p278_p9)  ;;  %vm2808_vm5 = vcmask (!%p278_p9), 261120   ;;  %vm2888_vm7 = vcmask (!%p278_p9), 125952   ;;  %vm3052_vm8 = vcmask (!%p278_p9), 24576  }
  0x11   : > { %3810 = vmatprep.subr.bf16.mxu0 (!%p278_p9), %v4294_v3  ;;  %v3820_v16 = vpack.c.bf16 (!%p278_p9), %v344_v15, %v343_v14  ;;  %v3823_v19 = vpack.c.bf16 (!%p278_p9), %v346_v18, %v345_v17  ;;  %v347_v20 = vld [vmem:[%s5382_s4 + $0x3e8] sm:$0xff] (!%p278_p9)  ;;  %v348_v21 = vld [vmem:[%s5382_s4 + $0x3f0] sm:$0xff] (!%p278_p9)  ;;  %v349_v23 = vld [vmem:[%s5382_s4 + $0x3f8] sm:$0xff] (!%p278_p9) }
  0x12   : > { %v3826_v22 = vpack.c.bf16 (!%p278_p9), %v348_v21, %v347_v20  ;;  %v350_v24 = vld [vmem:[%s5382_s4 + $0x400] sm:$0xff] (!%p278_p9)  ;;  %v351_v26 = vld [vmem:[%s5382_s4 + $0x408] sm:$0xff] (!%p278_p9)  ;;  %v352_v27 = vld [vmem:[%s5382_s4 + $0x410] sm:$0xff] (!%p278_p9)  ;;  %v4295_v20 = vmov (!%p278_p9), 0.0  }
  0x13   : > { %v3829_v25 = vpack.c.bf16 (!%p278_p9), %v350_v24, %v349_v23  ;;  %v3832_v28 = vpack.c.bf16 (!%p278_p9), %v352_v27, %v351_v26  ;;  %v353_v29 = vld [vmem:[%s5382_s4 + $0x418] sm:$0xff] (!%p278_p9)  ;;  %v354_v30 = vld [vmem:[%s5382_s4 + $0x420] sm:$0xff] (!%p278_p9)  ;;  %v355_v32 = vld [vmem:[%s5382_s4 + $0x428] sm:$0xff] (!%p278_p9)  ;;  %589 = vmatprep.mubr.f32.mxu1 (!%p278_p9), %v4295_v20 }
  0x14   : > { %3812 = vmatpush1.bf16.msra.mxu0 (!%p278_p9), %v3811_v6  ;;  %v3835_v31 = vpack.c.bf16 (!%p278_p9), %v354_v30, %v353_v29  ;;  %v356_v33 = vld [vmem:[%s5382_s4 + $0x430] sm:$0xff] (!%p278_p9)  ;;  %v357_v35 = vld [vmem:[%s5382_s4 + $0x438] sm:$0xff] (!%p278_p9)  ;;  %v358_v36 = vld [vmem:[%s5382_s4 + $0x440] sm:$0xff] (!%p278_p9) }
  0x15   : > { %s4407_s25 = scalar_select %p318_p10, %s4365_s9, 1  ;;  %3813 = vmatprep.subr.bf16.mxu0 %v4294_v3  ;;  %v3838_v34 = vpack.c.bf16 %v356_v33, %v355_v32  ;;  %v3841_v37 = vpack.c.bf16 %v358_v36, %v357_v35  ;;  %v3173_v41 = vld [vmem:[%s5382_s4 + $0x380] ss:$0 sm:$0xff]  ;;  %v446_v43 = vld [vmem:[%s5382_s4 + $0x448] sm:$0xff]  ;;  %v447_v48 = vld [vmem:[%s5382_s4 + $0x450] sm:$0xff] }
  0x16   : > { %v492_v0 = vld [vmem:[%s5384_s6 + $0x18] sm:$0xff]  ;;  %v494_v1 = vld [vmem:[%s5384_s6 + $0x28] sm:$0xff]  ;;  %v491_v4 = vld [vmem:[%s5384_s6 + $0x10] sm:$0xff] }
  0x17   : > { %s3249_s17 = sshll.u32 %s4407_s25, 5  ;;  %v3843_v2 = vpack.c.bf16 %v494_v1, %v492_v0  ;;  %v493_v5 = vld [vmem:[%s5384_s6 + $0x20] sm:$0xff]  ;;  %v496_v7 = vld [vmem:[%s5384_s6 + $0x38] sm:$0xff]  ;;  %v498_v8 = vld [vmem:[%s5384_s6 + $0x48] sm:$0xff]  ;;  %s3172_s24 = sshll.u32 %s4407_s25, 2 }
  0x18   : > { %s4420_s20 = scalar_lea.vmem %s5378_s0, %s3249_s17  ;;  %3815 = vmatpush1.bf16.msra.mxu0 %v3814_v9  ;;  %v3845_v6 = vpack.c.bf16 %v493_v5, %v491_v4  ;;  %v3847_v9 = vpack.c.bf16 %v498_v8, %v496_v7  ;;  %v495_v10 = vld [vmem:[%s5384_s6 + $0x30] sm:$0xff]  ;;  %v497_v11 = vld [vmem:[%s5384_s6 + $0x40] sm:$0xff]  ;;  %v502_v14 = vld [vmem:[%s5384_s6 + $0x68] sm:$0xff]  ;;  %s3171_s17 = sshll.u32 %s4407_s25, 3 }
  0x19   : > { %v332_v12 = vld [vmem:[%s4420_s20 + $0x8] sm:$0xff]  ;;  %3816 = vmatprep.subr.bf16.mxu0 %v4294_v3  ;;  %v331_v38 = vld [vmem:[%s4420_s20] sm:$0xff]  ;;  %v334_v39 = vld [vmem:[%s4420_s20 + $0x18] sm:$0xff]  ;;  %3844 = vmatprep.subr.bf16.mxu1 %v3843_v2  ;;  %s326_s21 = scalar_lea.vmem %s5379_s1, %s3171_s17  ;;  %s330_s12 = scalar_lea.vmem %s5385_s7, %s3172_s24 }
  0x1a   : > { %3174 = vmatprep.mubr.msk.f32.mxu0 %vm364_vm0, %v332_v12  ;;  %v333_v40 = vld [vmem:[%s4420_s20 + $0x10] sm:$0xff]  ;;  %3846 = vmatpush1.bf16.msra.mxu1 %v3845_v6  ;;  %v3849_v12 = vpack.c.bf16 %v497_v11, %v495_v10  ;;  %v501_v17 = vld [vmem:[%s5384_s6 + $0x60] sm:$0xff]  ;;  %v504_v18 = vld [vmem:[%s5384_s6 + $0x78] sm:$0xff]  ;;  %s316_s25 = sand.u32 1, %s4284_s28  }
  0x1b   : > { %v499_v15 = vld [vmem:[%s5384_s6 + $0x50] sm:$0xff]  ;;  %3848 = vmatprep.subr.bf16.mxu1 %v3847_v9  ;;  %v505_v24 = vld [vmem:[%s5384_s6 + $0x80] sm:$0xff]  ;;  %v3177_v35 = vld [vmem:[%s5382_s4 + $0x1b8] ss:$0 sm:$0xff]  ;;  %s317_s22 = scalar_lea.vmem [#allocation2], %s316_s25  ;;  %s3059_s10 = scalar_lea.sflag [#allocation3], %s316_s25 }
  0x1c   : > { %3818 = vmatpush1.bf16.msra.mxu0 %v3817_v13  ;;  %v500_v13 = vld [vmem:[%s5384_s6 + $0x58] sm:$0xff]  ;;  %v3853_v21 = vpack.c.bf16 %v501_v17, %v499_v15  ;;  %v503_v23 = vld [vmem:[%s5384_s6 + $0x70] sm:$0xff]  ;;  %v3176_v33 = vld [vmem:[%s5382_s4 + $0x1c0] ss:$0 sm:$0xff] }
  0x1d   : > { %3819 = vmatprep.subr.bf16.mxu0 %v4294_v3  ;;  %vm4586_vm1 = vmpackc.low %vm364_vm0, %vm364_vm0  ;;  %v1447_v0 = vld [vmem:[%s5382_s4 + $0x68] sm:$0xff] }
  0x1e   : > { %3850 = vmatpush1.bf16.msra.mxu1 %v3849_v12  ;;  %vm4106_vm6 = vmpackc.low %vm2808_vm5, %vm2808_vm5 }
  0x20   : > { %3821 = vmatpush1.bf16.msra.mxu0 %v3820_v16  ;;  %v3851_v16 = vpack.c.bf16 %v502_v14, %v500_v13 }
  0x21   : > { %3822 = vmatprep.subr.bf16.mxu0 %v4294_v3 }
  0x22   : > { %3852 = vmatprep.subr.bf16.mxu1 %v3851_v16 }
  0x23   : > { %3854 = vmatpush1.bf16.msra.mxu1 %v3853_v21  ;;  %v798_v21 = vld [vmem:[%s5382_s4 + $0x268] sm:$0xff] }
  0x24   : > { %3824 = vmatpush1.bf16.msra.mxu0 %v3823_v19  ;;  %v506_v19 = vld [vmem:[%s5384_s6 + $0x88] sm:$0xff] }
  0x25   : > { %3825 = vmatprep.subr.bf16.mxu0 %v4294_v3 }
  0x28   : > { %3827 = vmatpush1.bf16.msra.mxu0 %v3826_v22  ;;  %v3855_v22 = vpack.c.bf16 %v506_v19, %v504_v18  ;;  %v797_v19 = vld [vmem:[%s5382_s4 + $0x260] sm:$0xff] }
  0x29   : > { %3828 = vmatprep.subr.bf16.mxu0 %v4294_v3 }
  0x2a   : > { %3856 = vmatprep.subr.bf16.mxu1 %v3855_v22  ;;  %v3869_v22 = vpack.c.bf16 %v798_v21, %v797_v19 }
  0x2c   : > { %3830 = vmatpush1.bf16.msra.mxu0 %v3829_v25  ;;  %v3857_v25 = vpack.c.bf16 %v505_v24, %v503_v23 }
  0x2d   : > { %3831 = vmatprep.subr.bf16.mxu0 %v4294_v3 }
  0x2e   : > { %3858 = vmatpush1.bf16.msra.mxu1 %v3857_v25 }
  0x30   : > { %3833 = vmatpush1.bf16.msra.mxu0 %v3832_v28 }
  0x31   : > { %3834 = vmatprep.subr.bf16.mxu0 %v4294_v3 }
  0x34   : > { %3836 = vmatpush1.bf16.msra.mxu0 %v3835_v31 }
  0x35   : > { %3837 = vmatprep.subr.bf16.mxu0 %v4294_v3 }
  0x38   : > { %3839 = vmatpush1.bf16.msra.mxu0 %v3838_v34 }
  0x39   : > { %3840 = vmatprep.subr.bf16.mxu0 %v4294_v3 }
  0x3c   : > { %3842 = vmatpush1.bf16.msra.mxu0 %v3841_v37 }
  0x3f   : > { %436 = vmatmul.mubr.f32.vlgmr.msra.gmra.mrb[0].mxu0 %v331_v38 }
  0x40   : > { %3175 = vmatprep.mubr.msk.f32.mxu0 %vm364_vm0, %v334_v39 }
  0x43   : > { %441 = vmatmul.mubr.f32.gmra.mrb[2].mxu0 %v333_v40 }
 0x112   : > { %v437_v42 = vpop.f32.mrb[0].mxu0 }
 0x113   : > { %v438_v44 = vadd.f32 %v3173_v41, %v437_v42  ;;  %v439_v45 = vpop.f32.mrb[1].mxu0  ;;  %v509_v42 = vlaneseq }
 0x114   : > { %v507_v45 = vld [vmem:[%s5384_s6] ss:$8 sm:$0x3] }
 0x115   : > { %v4498_v46 = vadd.f32 %v446_v43, %v438_v44  ;;  %v4571_v43 = vshrl.u32 %v509_v42, 7 }
 0x116   : > { %v442_v47 = vpop.f32.mrb[2].mxu0 }
 0x117   : > { %v443_v49 = vadd.f32 %v3173_v41, %v442_v47  ;;  %v444_v50 = vpop.f32.mrb[3].mxu0  ;;  %v450_v51 = vsel %vm364_vm0, %v4498_v46, 0.0  ;;  %v511_v44 = vsub.s32 0, %v4571_v43 }
 0x118   : > { %451 = vadd.xlane.f32.xlu0 %v450_v51 }
 0x119   : > { %v4505_v52 = vadd.f32 %v447_v48, %v443_v49  ;;  %v512_v47 = vrot.slane %v507_v45, %v511_v44  ;;  %v515_v48 = vsub.s32 1, %v4571_v43 }
 0x11b   : > { %v453_v53 = vsel %vm364_vm0, %v4505_v52, 0.0 }
 0x11c   : > { %454 = vadd.xlane.f32.xlu0 %v453_v53  ;;  %v516_v53 = vrot.slane %v507_v45, %v515_v48 }
 0x1a5   : > { %v452_v54 = vpop.xlane.xlu0 %451 }
 0x1a6   : > { %v457_v55 = vmul.f32 0.015625, %v452_v54 }
 0x1a8   : > { %v459_v56 = vsub.f32 %v4498_v46, %v457_v55 }
 0x1a9   : > { %v455_v57 = vpop.xlane.xlu0 %454 }
 0x1aa   : > { %v458_v58 = vmul.f32 0.015625, %v455_v57  ;;  %v461_v59 = vmul.f32 %v459_v56, %v459_v56 }
 0x1ac   : > { %v460_v60 = vsub.f32 %v4505_v52, %v458_v58  ;;  %v463_v61 = vsel %vm364_vm0, %v461_v59, 0.0 }
 0x1ad   : > { %464 = vadd.xlane.f32.xlu1 %v463_v61 }
 0x1ae   : > { %v462_v62 = vmul.f32 %v460_v60, %v460_v60 }
 0x1b0   : > { %v466_v63 = vsel %vm364_vm0, %v462_v62, 0.0 }
 0x1b1   : > { %467 = vadd.xlane.f32.xlu1 %v466_v63 }
 0x23a   : > { %v465_v26 = vpop.xlane.xlu1 %464 }
 0x23b   : > { %v469_v27 = vmul.f32 0.015625, %v465_v26 }
 0x23d   : > { %v471_v28 = vadd.f32 1e-06, %v469_v27  ;;  %v799_v27 = vld [vmem:[%s5382_s4 + $0x270] sm:$0xff] }
 0x23e   : > { %v468_v29 = vpop.xlane.xlu1 %467 }
 0x23f   : > { %4180 = vrsqrt.f32 %v471_v28  ;;  %v470_v30 = vmul.f32 0.015625, %v468_v29  ;;  %v800_v28 = vld [vmem:[%s5382_s4 + $0x278] sm:$0xff] }
 0x241   : > { %v472_v31 = vadd.f32 1e-06, %v470_v30 }
 0x243   : > { %4182 = vrsqrt.f32 %v472_v31  ;;  %v3873_v31 = vpack.c.bf16 %v800_v28, %v799_v27  ;;  %v3190_v28 = vld [vmem:[%s5382_s4 + $0x1c8] ss:$0 sm:$0xff] }
 0x249   : > { %v4181_v32 = vpop.eup %4180 }
 0x24a   : > { %v475_v34 = vmul.f32 %v4181_v32, %v459_v56  ;;  %v801_v32 = vld [vmem:[%s5382_s4 + $0x280] sm:$0xff] }
 0x24c   : > { %v482_v36 = vmul.f32 %v3176_v33, %v475_v34 }
 0x24d   : > { %v4183_v37 = vpop.eup %4182 }
 0x24e   : > { %v489_v38 = vadd.f32 %v3177_v35, %v482_v36  ;;  %v476_v39 = vmul.f32 %v4183_v37, %v460_v60  ;;  %v804_v36 = vld [vmem:[%s5382_s4 + $0x298] sm:$0xff] }
 0x250   : > { %3178 = vmatmul.mubr.msk.f32.vlgmr.msra.gmra.mrb[0].mxu1 %vm364_vm0, %v489_v38  ;;  %v483_v40 = vmul.f32 %v3176_v33, %v476_v39  ;;  %v802_v33 = vld [vmem:[%s5382_s4 + $0x288] sm:$0xff] }
 0x251   : > { %595 = vmatprep.mubr.f32.mxu1 %v4295_v20  ;;  %v3877_v34 = vpack.c.bf16 %v802_v33, %v801_v32  ;;  %v1153_v33 = vld [vmem:[%s5384_s6 + $0xa0] sm:$0xff] }
 0x252   : > { %v490_v41 = vadd.f32 %v3177_v35, %v483_v40  ;;  %v803_v35 = vld [vmem:[%s5382_s4 + $0x290] sm:$0xff] }
 0x253   : > { %v3881_v37 = vpack.c.bf16 %v804_v36, %v803_v35  ;;  %v3186_v40 = vld [vmem:[%s5382_s4 + $0x1b0] ss:$0 sm:$0xff]  ;;  %v1158_v35 = vld [vmem:[%s5384_s6 + $0xc8] sm:$0xff]  ;;  %v1160_v36 = vld [vmem:[%s5384_s6 + $0xd8] sm:$0xff] }
 0x254   : > { %3179 = vmatmul.mubr.msk.f32.gmra.mrb[2].mxu1 %vm364_vm0, %v490_v41 }
 0x323   : > { %v591_v49 = vpop.f32.mrb[0].mxu1 }
 0x324   : > { %v592_v50 = vadd.f32 %v591_v49, %v512_v47  ;;  %v593_v51 = vpop.f32.mrb[1].mxu1 }
 0x325   : > { %v594_v57 = vadd.f32 %v593_v51, %v516_v53 }
 0x326   : > { %3439 = vmatprep.mubr.msk.f32.mxu1 %vm364_vm0, %v592_v50 }
 0x327   : > { %v597_v54 = vpop.f32.mrb[2].mxu1 }
 0x328   : > { %v598_v55 = vadd.f32 %v597_v54, %v512_v47  ;;  %v599_v56 = vpop.f32.mrb[3].mxu1 }
 0x329   : > { %v600_v58 = vadd.f32 %v599_v56, %v516_v53 }
 0x32a   : > { %v4175_v59 = vpack.i.bf16 %v598_v55, %v592_v50 }
 0x32b   : > { %v3865_v60 = vpack.c.bf16 %v600_v58, %v594_v57 }
 0x32c   : > { %4176 = vrot.lane.b32.xlu0 %v4175_v59, %s4296_s19 }
 0x39e   : > { %v4177_v61 = vpop.permute.xlu0 %4176 }
 0x39f   : > { %v4179_v62 = vunpack.i.h.bf16 %v4177_v61  ;;  %v4178_v63 = vunpack.i.l.bf16 %v4177_v61 }
 0x3a1   : > { %v3859_v1 = vpack.c.bf16 %v4179_v62, %v4178_v63  ;;  %v933_v62 = vld [vmem:[%s5383_s5 + $0x50] sm:$0xff]  ;;  %v934_v63 = vld [vmem:[%s5383_s5 + $0x58] sm:$0xff] }
 0x3a3   : > { %3861 = vmatprep.subr.msk.bf16.mxu1 %vm4586_vm1, %v3859_v1 }
 0x3a4   : > { %3864 = vmatpush3.bf16.xpose.msk.msra.mxu1 %vm4586_vm1, %v3859_v1  ;;  %v3885_v1 = vpack.c.bf16 %v934_v63, %v933_v62  ;;  %v1047_v62 = vld [vmem:[%s5382_s4 + $0x1f0] sm:$0xff]  ;;  %v1048_v63 = vld [vmem:[%s5382_s4 + $0x1f8] sm:$0xff] }
 0x3a5   : > { %3866 = vmatprep.subr.bf16.mxu1 %v3865_v60 }
 0x3ab   : > { %3440 = vmatmul.mubr.msk.f32.vlgmr.msra.gmra.mrb[4].mxu1 %vm364_vm0, %v598_v55 }
 0x3ac   : > { %3868 = vmatpush3.bf16.msra.mxu1 %v3865_v60 }
 0x3ad   : > { %3870 = vmatprep.subr.bf16.mxu1 %v3869_v22 }
 0x47e   : > { %v3441_v2 = vpop.f32.mrb[4].mxu1 }
 0x47f   : > { %v682_v4 = vpop.f32.mrb[5].mxu1  ;;  %v692_v6 = vmul.f32 0.125, %v3441_v2  ;;  %v935_v2 = vld [vmem:[%s5383_s5 + $0x60] sm:$0xff] }
 0x480   : > { %v691_v5 = vmul.f32 0.125, %v682_v4  ;;  %v936_v4 = vld [vmem:[%s5383_s5 + $0x68] sm:$0xff] }
 0x481   : > { %v697_v8 = vsel %vm693_vm2, %v692_v6, -inf }
 0x482   : > { %v694_v7 = vsel %vm693_vm2, %v691_v5, -inf }
 0x483   : > { %695 = vmax.xlane.f32.xlu1 %v694_v7  ;;  %v938_v7 = vld [vmem:[%s5383_s5 + $0x78] sm:$0xff] }
 0x487   : > { %698 = vmax.xlane.f32.xlu1 %v697_v8 }
 0x510   : > { %v696_v9 = vpop.xlane.xlu1 %695 }
 0x511   : > { %v700_v10 = vsub.f32 %v691_v5, %v696_v9  ;;  %v3889_v5 = vpack.c.bf16 %v936_v4, %v935_v2  ;;  %v939_v9 = vld [vmem:[%s5383_s5 + $0x80] sm:$0xff]  ;;  %v1050_v4 = vld [vmem:[%s5382_s4 + $0x208] sm:$0xff] }
 0x512   : > { %v1049_v2 = vld [vmem:[%s5382_s4 + $0x200] sm:$0xff] }
 0x513   : > { %v702_v11 = vmul.f32 1.442695, %v700_v10  ;;  %v940_v10 = vld [vmem:[%s5383_s5 + $0x88] sm:$0xff] }
 0x514   : > { %v699_v12 = vpop.xlane.xlu1 %698 }
 0x515   : > { %4184 = vpow2.f32 %v702_v11  ;;  %v701_v13 = vsub.f32 %v692_v6, %v699_v12  ;;  %v937_v6 = vld [vmem:[%s5383_s5 + $0x70] sm:$0xff]  ;;  %v3897_v11 = vpack.c.bf16 %v940_v10, %v939_v9  ;;  %v1154_v12 = vld [vmem:[%s5384_s6 + $0xa8] sm:$0xff]  ;;  %v1053_v9 = vld [vmem:[%s5382_s4 + $0x220] sm:$0xff] }
 0x516   : > { %v3893_v8 = vpack.c.bf16 %v938_v7, %v937_v6  ;;  %v1051_v6 = vld [vmem:[%s5382_s4 + $0x210] sm:$0xff]  ;;  %v1052_v7 = vld [vmem:[%s5382_s4 + $0x218] sm:$0xff]  ;;  %v1054_v10 = vld [vmem:[%s5382_s4 + $0x228] sm:$0xff] }
 0x517   : > { %v704_v14 = vmul.f32 1.442695, %v701_v13  ;;  %v1156_v13 = vld [vmem:[%s5384_s6 + $0xb8] sm:$0xff] }
 0x519   : > { %4186 = vpow2.f32 %v704_v14  ;;  %v3933_v14 = vpack.c.bf16 %v1156_v13, %v1154_v12  ;;  %v1055_v12 = vld [vmem:[%s5382_s4 + $0x230] sm:$0xff]  ;;  %v1056_v13 = vld [vmem:[%s5382_s4 + $0x238] sm:$0xff] }
 0x51f   : > { %v4185_v15 = vpop.eup %4184 }
 0x520   : > { %v706_v16 = vsel %vm693_vm2, %v4185_v15, 0.0 }
 0x521   : > { %707 = vadd.xlane.f32.xlu1 %v706_v16  ;;  %v1046_v16 = vld [vmem:[%s5382_s4 + $0x1e8] sm:$0xff] }
 0x523   : > { %v4187_v17 = vpop.eup %4186 }
 0x524   : > { %v709_v18 = vsel %vm693_vm2, %v4187_v17, 0.0 }
 0x525   : > { %710 = vadd.xlane.f32.xlu1 %v709_v18 }
 0x5ae   : > { %v708_v23 = vpop.xlane.xlu1 %707 }
 0x5af   : > { %4188 = vrcp.f32 %v708_v23 }
 0x5b2   : > { %v711_v24 = vpop.xlane.xlu1 %710 }
 0x5b3   : > { %4190 = vrcp.f32 %v711_v24 }
 0x5b9   : > { %v4189_v25 = vpop.eup %4188 }
 0x5ba   : > { %v714_v26 = vmul.f32 %v4189_v25, %v4185_v15  ;;  %v1045_v15 = vld [vmem:[%s5382_s4 + $0x1e0] sm:$0xff] }
 0x5bc   : > { %3446 = vmatprep.mubr.msk.f32.mxu1 %vm693_vm2, %v714_v26  ;;  %v3189_v26 = vld [vmem:[%s5382_s4 + $0x1d0] ss:$0 sm:$0xff] }
 0x5bd   : > { %v4191_v29 = vpop.eup %4190 }
 0x5be   : > { %v715_v30 = vmul.f32 %v4191_v29, %v4187_v17  ;;  %v3901_v17 = vpack.c.bf16 %v1046_v16, %v1045_v15  ;;  %v1057_v15 = vld [vmem:[%s5382_s4 + $0x240] sm:$0xff]  ;;  %v1058_v16 = vld [vmem:[%s5382_s4 + $0x248] sm:$0xff] }
 0x5c0   : > { %3447 = vmatmul.mubr.msk.f32.vlgmr.msra.gmra.mrb[6].mxu1 %vm693_vm2, %v715_v30  ;;  %3902 = vmatprep.subr.bf16.mxu0 %v3901_v17 }
 0x5c1   : > { %3872 = vmatpush3.bf16.msra.mxu1 %v3869_v22  ;;  %3904 = vmatpush3.bf16.msra.mxu0 %v3901_v17  ;;  %v3925_v17 = vpack.c.bf16 %v1058_v16, %v1057_v15  ;;  %v1536_v15 = vld [vmem:[%s5382_s4 + $0x30] sm:$0xff]  ;;  %v1150_v16 = vld [vmem:[%s5382_s4 + $0x1a0] sm:$0xff] }
 0x5c2   : > { %3874 = vmatprep.subr.bf16.mxu1 %v3873_v31 }
 0x5c5   : > { %3876 = vmatpush3.bf16.msra.mxu1 %v3873_v31 }
 0x5c6   : > { %3878 = vmatprep.subr.bf16.mxu1 %v3877_v34 }
 0x5c9   : > { %3880 = vmatpush3.bf16.msra.mxu1 %v3877_v34  ;;  %v1155_v34 = vld [vmem:[%s5384_s6 + $0xb0] sm:$0xff] }
 0x5ca   : > { %3882 = vmatprep.subr.bf16.mxu1 %v3881_v37 }
 0x5cd   : > { %3884 = vmatpush3.bf16.msra.mxu1 %v3881_v37 }
 0x5ce   : > { %3886 = vmatprep.subr.bf16.mxu1 %v3885_v1 }
 0x693   : > { %v3448_v38 = vpop.f32.mrb[6].mxu1 }
 0x694   : > { %v788_v39 = vpop.f32.mrb[7].mxu1 }
 0x695   : > { %3465 = vmatprep.mubr.msk.f32.mxu1 %vm364_vm0, %v788_v39 }
 0x696   : > { %3466 = vmatmul.mubr.msk.f32.vlgmr.msra.gmra.mrb[8].mxu1 %vm364_vm0, %v3448_v38  ;;  %v3935_v38 = vpack.c.bf16 %v1155_v34, %v1153_v33 }
 0x697   : > { %3888 = vmatpush3.bf16.msra.mxu1 %v3885_v1  ;;  %v3905_v1 = vpack.c.bf16 %v1048_v63, %v1047_v62 }
 0x698   : > { %3890 = vmatprep.subr.bf16.mxu1 %v3889_v5 }
 0x699   : > { %3906 = vmatprep.subr.bf16.mxu0 %v3905_v1 }
 0x69a   : > { %3908 = vmatpush3.bf16.msra.mxu0 %v3905_v1 }
 0x69b   : > { %3892 = vmatpush3.bf16.msra.mxu1 %v3889_v5  ;;  %v3909_v5 = vpack.c.bf16 %v1050_v4, %v1049_v2 }
 0x69c   : > { %3894 = vmatprep.subr.bf16.mxu1 %v3893_v8 }
 0x69d   : > { %3910 = vmatprep.subr.bf16.mxu0 %v3909_v5 }
 0x69e   : > { %3912 = vmatpush3.bf16.msra.mxu0 %v3909_v5  ;;  %v1533_v5 = vld [vmem:[%s5382_s4 + $0x18] sm:$0xff] }
 0x69f   : > { %3896 = vmatpush3.bf16.msra.mxu1 %v3893_v8  ;;  %v3913_v8 = vpack.c.bf16 %v1052_v7, %v1051_v6  ;;  %v1534_v6 = vld [vmem:[%s5382_s4 + $0x20] sm:$0xff] }
 0x6a0   : > { %3898 = vmatprep.subr.bf16.mxu1 %v3897_v11  ;;  %v3961_v7 = vpack.c.bf16 %v1534_v6, %v1533_v5  ;;  %v3202_v6 = vld [vmem:[%s5382_s4 + $0xd8] ss:$0 sm:$0xff] }
 0x6a1   : > { %3914 = vmatprep.subr.bf16.mxu0 %v3913_v8 }
 0x6a2   : > { %3916 = vmatpush3.bf16.msra.mxu0 %v3913_v8  ;;  %v3194_v8 = vld [vmem:[%s5382_s4 + $0x1d8] ss:$0 sm:$0xff] }
 0x6a3   : > { %3900 = vmatpush3.bf16.msra.mxu1 %v3897_v11  ;;  %v3917_v11 = vpack.c.bf16 %v1054_v10, %v1053_v9 }
 0x6a4   : > { %3934 = vmatprep.subr.bf16.mxu1 %v3933_v14  ;;  %v3921_v14 = vpack.c.bf16 %v1056_v13, %v1055_v12  ;;  %v3195_v12 = vld [vmem:[%s5382_s4 + $0x378] ss:$0 sm:$0xff] }
 0x6a5   : > { %3918 = vmatprep.subr.bf16.mxu0 %v3917_v11 }
 0x6a6   : > { %3920 = vmatpush3.bf16.msra.mxu0 %v3917_v11 }
 0x6a7   : > { %3922 = vmatprep.subr.bf16.mxu0 %v3921_v14 }
 0x6aa   : > { %3924 = vmatpush3.bf16.msra.mxu0 %v3921_v14  ;;  %v1535_v14 = vld [vmem:[%s5382_s4 + $0x28] sm:$0xff] }
 0x6ab   : > { %3926 = vmatprep.subr.bf16.mxu0 %v3925_v17 }
 0x6ae   : > { %3928 = vmatpush3.bf16.msra.mxu0 %v3925_v17 }
 0x769   : > { %v3467_v41 = vpop.f32.mrb[8].mxu1 }
 0x76a   : > { %v882_v42 = vpop.f32.mrb[9].mxu1  ;;  %v888_v45 = vadd.f32 %v3467_v41, %v3186_v40  ;;  %v1157_v41 = vld [vmem:[%s5384_s6 + $0xc0] sm:$0xff] }
 0x76b   : > { %v883_v47 = vadd.f32 %v3186_v40, %v882_v42  ;;  %v3937_v40 = vpack.c.bf16 %v1160_v36, %v1158_v35  ;;  %v1159_v42 = vld [vmem:[%s5384_s6 + $0xd0] sm:$0xff] }
 0x76c   : > { %v4634_v50 = vadd.f32 %v888_v45, %v4505_v52  ;;  %v1162_v45 = vld [vmem:[%s5384_s6 + $0xe8] sm:$0xff]  ;;  %v3196_v35 = vld [vmem:[%s5384_s6 + $0x90] ss:$8 sm:$0x3] }
 0x76d   : > { %v4631_v49 = vadd.f32 %v883_v47, %v4498_v46  ;;  %v1164_v47 = vld [vmem:[%s5384_s6 + $0xf8] sm:$0xff] }
 0x76e   : > { %v896_v53 = vsel %vm364_vm0, %v4634_v50, 0.0 }
 0x76f   : > { %v893_v51 = vsel %vm364_vm0, %v4631_v49, 0.0 }
 0x770   : > { %894 = vadd.xlane.f32.xlu1 %v893_v51  ;;  %v3939_v51 = vpack.c.bf16 %v1159_v42, %v1157_v41 }
 0x774   : > { %897 = vadd.xlane.f32.xlu1 %v896_v53  ;;  %v3941_v53 = vpack.c.bf16 %v1164_v47, %v1162_v45 }
 0x7fd   : > { %v895_v54 = vpop.xlane.xlu1 %894 }
 0x7fe   : > { %v899_v55 = vmul.f32 0.015625, %v895_v54  ;;  %v1161_v54 = vld [vmem:[%s5384_s6 + $0xe0] sm:$0xff] }
 0x800   : > { %v901_v56 = vsub.f32 %v4631_v49, %v899_v55  ;;  %v1163_v55 = vld [vmem:[%s5384_s6 + $0xf0] sm:$0xff] }
 0x801   : > { %v898_v57 = vpop.xlane.xlu1 %897 }
 0x802   : > { %v900_v58 = vmul.f32 0.015625, %v898_v57  ;;  %v903_v59 = vmul.f32 %v901_v56, %v901_v56  ;;  %v1168_v57 = vld [vmem:[%s5384_s6 + $0x118] sm:$0xff] }
 0x804   : > { %v902_v46 = vsub.f32 %v4634_v50, %v900_v58  ;;  %v905_v52 = vsel %vm364_vm0, %v903_v59, 0.0  ;;  %v3943_v58 = vpack.c.bf16 %v1163_v55, %v1161_v54  ;;  %v1179_v54 = vrot.slane %v3196_v35, %v515_v48 }
 0x805   : > { %906 = vadd.xlane.f32.xlu0 %v905_v52  ;;  %v1167_v52 = vld [vmem:[%s5384_s6 + $0x110] sm:$0xff] }
 0x806   : > { %v904_v60 = vmul.f32 %v902_v46, %v902_v46 }
 0x808   : > { %v908_v61 = vsel %vm364_vm0, %v904_v60, 0.0 }
 0x809   : > { %909 = vadd.xlane.f32.xlu1 %v908_v61  ;;  %v4735_v61 = vld [vmem:[%s326_s21] sm:$0xff]  ;;  %s3246_s21 = sshll.u32 %s4365_s9, 4  ;;  %s4298_s9 = smov [#allocation2]  }
 0x80a   : > { %s5336_s26 = scalar_lea.hbm %s5386_s8, %s3246_s21  ;;  %s4234_s13 = sshll.u32 %s4298_s9, 4  ;;  %s4235_s13 = int_to_ptr.vmem [resolvable:$false] %s4234_s13 }
 0x80b   : > { %s4236_s17 = scalar_lea.vmem %s4235_s13, 32 }
 0x892   : > { %v907_v18 = vpop.xlane.xlu0 %906 }
 0x893   : > { %v911_v19 = vmul.f32 0.015625, %v907_v18  ;;  %v1059_v18 = vld [vmem:[%s5382_s4 + $0x250] sm:$0xff] }
 0x895   : > { %v913_v21 = vadd.f32 1e-06, %v911_v19  ;;  %v1060_v19 = vld [vmem:[%s5382_s4 + $0x258] sm:$0xff] }
 0x896   : > { %v910_v22 = vpop.xlane.xlu1 %909 }
 0x897   : > { %4192 = vrsqrt.f32 %v913_v21  ;;  %v912_v23 = vmul.f32 0.015625, %v910_v22  ;;  %v3929_v21 = vpack.c.bf16 %v1060_v19, %v1059_v18  ;;  %v3191_v22 = vld [vmem:[%s5383_s5 + $0x48] ss:$0 sm:$0xff]  ;;  %v3965_v18 = vpack.c.bf16 %v1536_v15, %v1535_v14  ;;  %v1632_v14 = vld [vmem:[%s5382_s4 + $0xc0] sm:$0xff] }
 0x899   : > { %v914_v24 = vadd.f32 1e-06, %v912_v23  ;;  %3930 = vmatprep.subr.bf16.mxu0 %v3929_v21 }
 0x89a   : > { %3932 = vmatpush3.bf16.msra.mxu0 %v3929_v21  ;;  %v1537_v21 = vld [vmem:[%s5382_s4 + $0x38] sm:$0xff] }
 0x89b   : > { %4194 = vrsqrt.f32 %v914_v24  ;;  %3527 = vmatprep.subr.mxu0 %v4295_v20 }
 0x8a1   : > { %v4193_v25 = vpop.eup %4192 }
 0x8a2   : > { %v917_v27 = vmul.f32 %v4193_v25, %v901_v56  ;;  %v1166_v56 = vld [vmem:[%s5384_s6 + $0x108] sm:$0xff] }
 0x8a3   : > { %v3945_v59 = vpack.c.bf16 %v1168_v57, %v1166_v56 }
 0x8a4   : > { %v924_v29 = vmul.f32 %v3189_v26, %v917_v27 }
 0x8a5   : > { %v4195_v30 = vpop.eup %4194 }
 0x8a6   : > { %v918_v31 = vmul.f32 %v4195_v30, %v902_v46  ;;  %v931_v32 = vadd.f32 %v3190_v28, %v924_v29  ;;  %v1165_v46 = vld [vmem:[%s5384_s6 + $0x100] sm:$0xff] }
 0x8a7   : > { %v3947_v60 = vpack.c.bf16 %v1167_v52, %v1165_v46 }
 0x8a8   : > { %v925_v37 = vmul.f32 %v3189_v26, %v918_v31  ;;  %3484 = vmatprep.mubr.msk.f32.mxu1 %vm364_vm0, %v931_v32 }
 0x8aa   : > { %v932_v39 = vadd.f32 %v3190_v28, %v925_v37 }
 0x8ac   : > { %3485 = vmatmul.mubr.msk.f32.vlgmr.msra.gmra.mrb[10].mxu1 %vm364_vm0, %v932_v39 }
 0x8ad   : > { %3936 = vmatpush1.bf16.msra.mxu1 %v3935_v38  ;;  %1249 = vmatprep.mubr.f32.mxu1 %v4295_v20  ;;  %v1175_v38 = vrot.slane %v3196_v35, %v511_v44  ;;  %v3205_v35 = vld [vmem:[%s5382_s4] ss:$0 sm:$0xff] }
 0x8ae   : > { %3938 = vmatprep.subr.bf16.mxu1 %v3937_v40 }
 0x8b1   : > { %3940 = vmatpush1.bf16.msra.mxu1 %v3939_v51 }
 0x8b2   : > { %3942 = vmatprep.subr.bf16.mxu1 %v3941_v53 }
 0x8b5   : > { %3944 = vmatpush1.bf16.msra.mxu1 %v3943_v58 }
 0x8b6   : > { %3946 = vmatprep.subr.bf16.mxu1 %v3945_v59 }
 0x8b9   : > { %3948 = vmatpush1.bf16.msra.mxu1 %v3947_v60 }
 0x8ba   : > { %3522 = vmatprep.subr.mxu1 %v4295_v20 }
 0x8bc   : > { %3197 = vmatmul.mubr.msk.f32.vlgmr.msra.gmra.mrb[12].mxu1 %vm364_vm0, %v4735_v61 }
 0x8bd   : > { %3524 = vmatprep.mubr.msk.f32.mxu1 %vm4297_vm3, %v4295_v20 }
 0x97f   : > { %v3486_v23 = vpop.f32.mrb[10].mxu1 }
 0x980   : > { %v1024_v24 = vadd.f32 %v3486_v23, %v3191_v22  ;;  %v1018_v25 = vpop.f32.mrb[11].mxu1 }
 0x981   : > { %v1019_v26 = vadd.f32 %v3191_v22, %v1018_v25  ;;  %v1538_v22 = vld [vmem:[%s5382_s4 + $0x40] sm:$0xff]  ;;  %v1539_v25 = vld [vmem:[%s5382_s4 + $0x48] sm:$0xff] }
 0x982   : > { %v1028_v27 = vmul.f32 %v1024_v24, %v1024_v24 }
 0x983   : > { %v1027_v28 = vmul.f32 %v1019_v26, %v1019_v26 }
 0x984   : > { %v1030_v29 = vmul.f32 %v1028_v27, %v1024_v24 }
 0x985   : > { %v1029_v30 = vmul.f32 %v1027_v28, %v1019_v26 }
 0x986   : > { %v1032_v31 = vmul.f32 0.044715, %v1030_v29 }
 0x987   : > { %v1031_v32 = vmul.f32 0.044715, %v1029_v30  ;;  %v1151_v30 = vld [vmem:[%s5382_s4 + $0x1a8] sm:$0xff] }
 0x988   : > { %v1034_v33 = vadd.f32 %v1032_v31, %v1024_v24 }
 0x989   : > { %v1033_v34 = vadd.f32 %v1031_v32, %v1019_v26 }
 0x98a   : > { %v1036_v36 = vmul.f32 0.7978846, %v1034_v33 }
 0x98b   : > { %v1035_v37 = vmul.f32 0.7978846, %v1033_v34 }
 0x98c   : > { %4196 = vtanh.f32 %v1036_v36 }
 0x98d   : > { %4198 = vtanh.f32 %v1035_v37 }
 0x98f   : > { %v1251_v39 = vpop.f32.mrb[12].mxu1 }
 0x990   : > { %v1252_v40 = vadd.f32 %v1251_v39, %v1175_v38  ;;  %v1253_v41 = vpop.f32.mrb[13].mxu1 }
 0x991   : > { %v1254_v58 = vadd.f32 %v1253_v41, %v1179_v54 }
 0x992   : > { %1257 = vrot.lane.b32.xlu1 %v1252_v40, %s4296_s19 }
 0x996   : > { %v4197_v42 = vpop.eup %4196 }
 0x997   : > { %v4199_v45 = vpop.eup %4198  ;;  %v1040_v47 = vadd.f32 1.0, %v4197_v42 }
 0x998   : > { %v1039_v51 = vadd.f32 1.0, %v4199_v45 }
 0x999   : > { %v1042_v53 = vmul.f32 0.5, %v1040_v47 }
 0x99a   : > { %v1041_v55 = vmul.f32 0.5, %v1039_v51  ;;  %v1445_v51 = vld [vmem:[%s5382_s4 + $0x58] sm:$0xff] }
 0x99b   : > { %v1044_v57 = vmul.f32 %v1042_v53, %v1024_v24  ;;  %v3969_v24 = vpack.c.bf16 %v1538_v22, %v1537_v21  ;;  %v1446_v53 = vld [vmem:[%s5382_s4 + $0x60] sm:$0xff] }
 0x99c   : > { %v1043_v56 = vmul.f32 %v1041_v55, %v1019_v26  ;;  %v1540_v26 = vld [vmem:[%s5382_s4 + $0x50] sm:$0xff]  ;;  %v3950_v54 = vpack.c.bf16 %v1446_v53, %v1445_v51 }
 0x99d   : > { %v3973_v28 = vpack.c.bf16 %v1540_v26, %v1539_v25  ;;  %v1448_v55 = vld [vmem:[%s5382_s4 + $0x70] sm:$0xff] }
 0x99e   : > { %3519 = vmatprep.mubr.f32.mxu0 %v1043_v56  ;;  %v3953_v56 = vpack.c.bf16 %v1448_v55, %v1447_v0 }
 0x99f   : > { %3520 = vmatmul.mubr.f32.vlgmr.msra.gmra.mrb[4].mxu0 %v1044_v57  ;;  %v1449_v57 = vld [vmem:[%s5382_s4 + $0x78] sm:$0xff] }
 0x9a0   : > { %3528 = vmatpush3.msra.mxu0 %v1254_v58  ;;  %3529 = vmatprep.mubr.msk.f32.mxu0 %vm4297_vm3, %v4295_v20  ;;  %v1450_v58 = vld [vmem:[%s5382_s4 + $0x80] sm:$0xff] }
 0x9a1   : > { %3962 = vmatprep.subr.bf16.mxu0 %v3961_v7 }
 0xa04   : > { %v1258_v44 = vpop.permute.xlu1 %1257 }
 0xa05   : > { %3523 = vmatpush3.xpose.msk.msra.mxu1 %vm364_vm0, %v1258_v44  ;;  %v3956_v44 = vpack.c.bf16 %v1450_v58, %v1449_v57  ;;  %v1911_v57 = vld [vmem:[%s5383_s5 + $0x8] sm:$0xff]  ;;  %v1912_v58 = vld [vmem:[%s5383_s5 + $0x10] sm:$0xff] }
 0xa06   : > { %3949 = vmatprep.subr.bf16.mxu1 %v4294_v3 }
 0xa08   : > { %3525 = vmatmul.mubr.msk.f32.vlgmr.msra.gmra.mrb[14].mxu1 %vm364_vm0, %v1252_v40 }
 0xa09   : > { %3548 = vmatprep.mubr.msk.f32.mxu1 %vm4297_vm3, %v4295_v20  ;;  %3951 = vmatpush3.bf16.msra.mxu1 %v3950_v54 }
 0xa0a   : > { %3952 = vmatprep.subr.bf16.mxu1 %v4294_v3 }
 0xa0d   : > { %3954 = vmatpush3.bf16.msra.mxu1 %v3953_v56 }
 0xa0e   : > { %3955 = vmatprep.subr.bf16.mxu1 %v4294_v3 }
 0xa11   : > { %3957 = vmatpush3.bf16.msra.mxu1 %v3956_v44  ;;  %v4001_v44 = vpack.c.bf16 %v1912_v58, %v1911_v57 }
 0xa12   : > { %3958 = vmatprep.subr.bf16.mxu1 %v4294_v3 }
 0xa72   : > { %v3521_v43 = vpop.f32.mrb[4].mxu0 }
 0xa73   : > { %v1132_v48 = vpop.f32.mrb[5].mxu0  ;;  %v1138_v23 = vadd.f32 %v3521_v43, %v3194_v8  ;;  %v1451_v43 = vld [vmem:[%s5382_s4 + $0x88] sm:$0xff] }
 0xa74   : > { %v1133_v10 = vadd.f32 %v3194_v8, %v1132_v48  ;;  %v1452_v48 = vld [vmem:[%s5382_s4 + $0x90] sm:$0xff] }
 0xa75   : > { %v1142_v27 = vadd.f32 %v1138_v23, %v4634_v50  ;;  %v1630_v8 = vld [vmem:[%s5382_s4 + $0xb0] sm:$0xff] }
 0xa76   : > { %v1141_v11 = vadd.f32 %v1133_v10, %v4631_v49 }
 0xa77   : > { %v4848_v29 = vadd.f32 %v3195_v12, %v1142_v27 }
 0xa78   : > { %v4818_v13 = vadd.f32 %v3195_v12, %v1141_v11  ;;  %v1631_v12 = vld [vmem:[%s5382_s4 + $0xb8] sm:$0xff] }
 0xa79   : > { %v4854_v31 = vadd.f32 %v1151_v30, %v4848_v29  ;;  %v3985_v15 = vpack.c.bf16 %v1632_v14, %v1631_v12  ;;  %v2002_v12 = vld [vmem:[%s5382_s4 + $0x140] sm:$0xff]  ;;  %v2003_v14 = vld [vmem:[%s5382_s4 + $0x148] sm:$0xff] }
 0xa7a   : > { %v4830_v19 = vadd.f32 %v1150_v16, %v4818_v13  ;;  %v1633_v16 = vld [vmem:[%s5382_s4 + $0xc8] sm:$0xff] }
 0xadb   : > { %v1329_v59 = vpop.f32.mrb[14].mxu1 }
 0xadc   : > { %v1333_v46 = vmul.f32 0.125, %v1329_v59  ;;  %v3526_v52 = vpop.f32.mrb[15].mxu1  ;;  %v1627_v59 = vld [vmem:[%s5382_s4 + $0x98] sm:$0xff] }
 0xadd   : > { %v1628_v52 = vld [vmem:[%s5382_s4 + $0xa0] sm:$0xff] }
 0xade   : > { %v1335_v60 = vsel %vm1334_vm4, %v1333_v46, -inf }
 0xadf   : > { %1336 = vmax.xlane.f32.xlu1 %v1335_v60  ;;  %v3977_v60 = vpack.c.bf16 %v1628_v52, %v1627_v59  ;;  %v1916_v52 = vld [vmem:[%s5383_s5 + $0x30] sm:$0xff] }
 0xb6c   : > { %v1337_v62 = vpop.xlane.xlu1 %1336 }
 0xb6d   : > { %v1338_v63 = vsub.f32 %v1333_v46, %v1337_v62  ;;  %v3959_v46 = vpack.c.bf16 %v1452_v48, %v1451_v43  ;;  %v1913_v43 = vld [vmem:[%s5383_s5 + $0x18] sm:$0xff]  ;;  %v1914_v48 = vld [vmem:[%s5383_s5 + $0x20] sm:$0xff] }
 0xb6e   : > { %v4004_v59 = vpack.c.bf16 %v1914_v48, %v1913_v43 }
 0xb6f   : > { %v1339_v1 = vmul.f32 1.442695, %v1338_v63  ;;  %3960 = vmatpush3.bf16.msra.mxu1 %v3959_v46  ;;  %v1915_v46 = vld [vmem:[%s5383_s5 + $0x28] sm:$0xff] }
 0xb70   : > { %3978 = vmatprep.subr.bf16.mxu1 %v3977_v60 }
 0xb71   : > { %4200 = vpow2.f32 %v1339_v1 }
 0xb7b   : > { %v4201_v2 = vpop.eup %4200 }
 0xb7c   : > { %v1341_v4 = vsel %vm1334_vm4, %v4201_v2, 0.0 }
 0xb7d   : > { %1342 = vadd.xlane.f32.xlu0 %v1341_v4  ;;  %v3201_v4 = vld [vmem:[%s5382_s4 + $0xe0] ss:$0 sm:$0xff] }
 0xc0a   : > { %v1343_v9 = vpop.xlane.xlu0 %1342 }
 0xc0b   : > { %4202 = vrcp.f32 %v1343_v9 }
 0xc15   : > { %v4203_v17 = vpop.eup %4202 }
 0xc16   : > { %v1345_v49 = vmul.f32 %v4203_v17, %v4201_v2  ;;  %v1634_v17 = vld [vmem:[%s5382_s4 + $0xd0] sm:$0xff] }
 0xc18   : > { %3530 = vmatmul.mubr.msk.f32.vlgmr.msra.gmra.mrb[6].mxu0 %vm1334_vm4, %v1345_v49  ;;  %v3989_v49 = vpack.c.bf16 %v1634_v17, %v1633_v16  ;;  %v2004_v16 = vld [vmem:[%s5382_s4 + $0x150] sm:$0xff]  ;;  %v2005_v17 = vld [vmem:[%s5382_s4 + $0x158] sm:$0xff] }
 0xc19   : > { %3964 = vmatpush3.bf16.msra.mxu0 %v3961_v7  ;;  %3567 = vmatprep.mubr.msk.f32.mxu0 %vm364_vm0, %v4830_v19  ;;  %v1629_v7 = vld [vmem:[%s5382_s4 + $0xa8] sm:$0xff] }
 0xc1a   : > { %3966 = vmatprep.subr.bf16.mxu0 %v3965_v18  ;;  %v3981_v11 = vpack.c.bf16 %v1630_v8, %v1629_v7  ;;  %v1999_v7 = vld [vmem:[%s5382_s4 + $0x128] sm:$0xff]  ;;  %v2000_v8 = vld [vmem:[%s5382_s4 + $0x130] sm:$0xff] }
 0xc1d   : > { %3968 = vmatpush3.bf16.msra.mxu0 %v3965_v18  ;;  %v3203_v18 = vld [vmem:[%s5382_s4 + $0x8] ss:$0 sm:$0xff] }
 0xc1e   : > { %3970 = vmatprep.subr.bf16.mxu0 %v3969_v24 }
 0xc21   : > { %3972 = vmatpush3.bf16.msra.mxu0 %v3969_v24  ;;  %v3208_v24 = vld [vmem:[%s5382_s4 + $0x10] ss:$0 sm:$0xff] }
 0xc22   : > { %3974 = vmatprep.subr.bf16.mxu0 %v3973_v28 }
 0xc25   : > { %3976 = vmatpush3.bf16.msra.mxu0 %v3973_v28 }
 0xc26   : > { %3993 = vmatprep.subr.bf16.mxu0 %v4294_v3 }
 0xc28   : > { %3568 = vmatmul.mubr.msk.f32.vlgmr.msra.gmra.mrb[8].mxu0 %vm364_vm0, %v4854_v31 }
 0xc29   : > { %3593 = vmatprep.mubr.msk.f32.mxu0 %vm4297_vm3, %v4295_v20 }
 0xceb   : > { %v1415_v50 = vpop.f32.mrb[6].mxu0 }
 0xcec   : > { %v1419_v32 = vadd.f32 %v1415_v50, %v4735_v61  ;;  %v3531_v33 = vpop.f32.mrb[7].mxu0 }
 0xcee   : > { %v1420_v34 = vsel %vm364_vm0, %v1419_v32, 0.0 }
 0xcef   : > { %1421 = vadd.xlane.f32.xlu0 %v1420_v34 }
 0xcfb   : > { %v3569_v36 = vpop.f32.mrb[8].mxu0 }
 0xcfc   : > { %v1624_v37 = vadd.f32 %v3569_v36, %v3205_v35  ;;  %v1618_v38 = vpop.f32.mrb[9].mxu0 }
 0xcfd   : > { %v1619_v39 = vadd.f32 %v3205_v35, %v1618_v38 }
 0xcff   : > { %v3994_v40 = vpack.c.bf16 %v1624_v37, %v1619_v39 }
 0xd01   : > { %3996 = vmatpush3.bf16.xpose.msk.msra.mxu0 %vm4586_vm1, %v3994_v40 }
 0xd02   : > { %3997 = vmatprep.subr.bf16.mxu0 %v4294_v3 }
 0xd7c   : > { %v1422_v41 = vpop.xlane.xlu0 %1421 }
 0xd7d   : > { %v1423_v61 = vmul.f32 0.015625, %v1422_v41 }
 0xd7f   : > { %v1424_v42 = vsub.f32 %v1419_v32, %v1423_v61 }
 0xd81   : > { %v1425_v45 = vmul.f32 %v1424_v42, %v1424_v42 }
 0xd83   : > { %v1426_v47 = vsel %vm364_vm0, %v1425_v45, 0.0 }
 0xd84   : > { %1427 = vadd.xlane.f32.xlu0 %v1426_v47 }
 0xe11   : > { %v1428_v62 = vpop.xlane.xlu0 %1427 }
 0xe12   : > { %v1429_v63 = vmul.f32 0.015625, %v1428_v62  ;;  %v1917_v62 = vld [vmem:[%s5383_s5 + $0x38] sm:$0xff] }
 0xe14   : > { %v1430_v1 = vadd.f32 1e-06, %v1429_v63  ;;  %v1918_v63 = vld [vmem:[%s5383_s5 + $0x40] sm:$0xff] }
 0xe16   : > { %4204 = vrsqrt.f32 %v1430_v1  ;;  %v2115_v1 = vld [vmem:[%s5382_s4 + $0x2f0] sm:$0xff] }
 0xe20   : > { %v4205_v2 = vpop.eup %4204 }
 0xe21   : > { %v1432_v5 = vmul.f32 %v4205_v2, %v1424_v42  ;;  %v4010_v2 = vpack.c.bf16 %v1918_v63, %v1917_v62 }
 0xe23   : > { %v1438_v9 = vmul.f32 %v3201_v4, %v1432_v5  ;;  %v2116_v4 = vld [vmem:[%s5382_s4 + $0x2f8] sm:$0xff] }
 0xe24   : > { %v4036_v5 = vpack.c.bf16 %v2116_v4, %v2115_v1 }
 0xe25   : > { %v1444_v10 = vadd.f32 %v3202_v6, %v1438_v9  ;;  %v1998_v6 = vld [vmem:[%s5382_s4 + $0x120] sm:$0xff] }
 0xe26   : > { %v4013_v9 = vpack.c.bf16 %v1999_v7, %v1998_v6 }
 0xe27   : > { %3549 = vmatmul.mubr.msk.f32.vlgmr.msra.gmra.mrb[16].mxu1 %vm364_vm0, %v1444_v10 }
 0xe28   : > { %3980 = vmatpush3.bf16.msra.mxu1 %v3977_v60  ;;  %3586 = vmatprep.mubr.msk.f32.mxu1 %vm364_vm0, %v4818_v13  ;;  %v4007_v60 = vpack.c.bf16 %v1916_v52, %v1915_v46  ;;  %v3219_v52 = vld [vmem:[%s5382_s4 + $0x118] ss:$0 sm:$0xff] }
 0xe29   : > { %3982 = vmatprep.subr.bf16.mxu1 %v3981_v11 }
 0xe2c   : > { %3984 = vmatpush3.bf16.msra.mxu1 %v3981_v11 }
 0xe2d   : > { %3986 = vmatprep.subr.bf16.mxu1 %v3985_v15 }
 0xe30   : > { %3988 = vmatpush3.bf16.msra.mxu1 %v3985_v15  ;;  %v4019_v15 = vpack.c.bf16 %v2003_v14, %v2002_v12  ;;  %v2205_v12 = vld [vmem:[%s5383_s5 + $0xa8] sm:$0xff]  ;;  %v2206_v14 = vld [vmem:[%s5383_s5 + $0xb0] sm:$0xff] }
 0xe31   : > { %3990 = vmatprep.subr.bf16.mxu1 %v3989_v49 }
 0xe34   : > { %3992 = vmatpush3.bf16.msra.mxu1 %v3989_v49  ;;  %v4022_v49 = vpack.c.bf16 %v2005_v17, %v2004_v16  ;;  %v2207_v16 = vld [vmem:[%s5383_s5 + $0xb8] sm:$0xff]  ;;  %v2208_v17 = vld [vmem:[%s5383_s5 + $0xc0] sm:$0xff] }
 0xe35   : > { %4012 = vmatprep.subr.bf16.mxu1 %v4294_v3 }
 0xe37   : > { %3587 = vmatmul.mubr.msk.f32.vlgmr.msra.gmra.mrb[18].mxu1 %vm364_vm0, %v4848_v29 }
 0xe38   : > { %3654 = vmatprep.mubr.msk.f32.mxu1 %vm4297_vm3, %v4295_v20  ;;  %4014 = vmatpush3.bf16.msra.mxu1 %v4013_v9  ;;  %v2203_v9 = vld [vmem:[%s5383_s5 + $0x98] sm:$0xff] }
 0xe39   : > { %4015 = vmatprep.subr.bf16.mxu1 %v4294_v3 }
 0xefa   : > { %v1527_v21 = vpop.f32.mrb[16].mxu1 }
 0xefb   : > { %v1528_v22 = vadd.f32 %v3203_v18, %v1527_v21  ;;  %v3550_v23 = vpop.f32.mrb[17].mxu1  ;;  %v2006_v18 = vld [vmem:[%s5382_s4 + $0x160] sm:$0xff]  ;;  %v2007_v21 = vld [vmem:[%s5382_s4 + $0x168] sm:$0xff] }
 0xefc   : > { %v2008_v23 = vld [vmem:[%s5382_s4 + $0x170] sm:$0xff] }
 0xefd   : > { %3594 = vmatmul.mubr.msk.f32.vlgmr.msra.gmra.mrb[10].mxu0 %vm364_vm0, %v1528_v22  ;;  %v4025_v22 = vpack.c.bf16 %v2007_v21, %v2006_v18  ;;  %v2209_v18 = vld [vmem:[%s5383_s5 + $0xc8] sm:$0xff]  ;;  %v2210_v21 = vld [vmem:[%s5383_s5 + $0xd0] sm:$0xff] }
 0xefe   : > { %3600 = vmatprep.mubr.msk.f32.mxu0 %vm4297_vm3, %v4295_v20 }
 0xf0a   : > { %v3588_v25 = vpop.f32.mrb[18].mxu1 }
 0xf0b   : > { %v1718_v26 = vadd.f32 %v3588_v25, %v3208_v24  ;;  %v1712_v27 = vpop.f32.mrb[19].mxu1 }
 0xf0c   : > { %v1713_v28 = vadd.f32 %v3208_v24, %v1712_v27  ;;  %v2009_v24 = vld [vmem:[%s5382_s4 + $0x178] sm:$0xff]  ;;  %v2011_v27 = vld [vmem:[%s5382_s4 + $0x188] sm:$0xff] }
 0xf0d   : > { %v4028_v25 = vpack.c.bf16 %v2009_v24, %v2008_v23 }
 0xf0e   : > { %v3998_v30 = vpack.c.bf16 %v1718_v26, %v1713_v28  ;;  %v2010_v26 = vld [vmem:[%s5382_s4 + $0x180] sm:$0xff] }
 0xf0f   : > { %v4031_v28 = vpack.c.bf16 %v2011_v27, %v2010_v26  ;;  %v3220_v27 = vld [vmem:[%s5382_s4 + $0x100] ss:$0 sm:$0xff] }
 0xf10   : > { %3999 = vmatpush3.bf16.msra.mxu0 %v3998_v30 }
 0xf11   : > { %4000 = vmatprep.subr.bf16.mxu0 %v4294_v3 }
 0xfd0   : > { %v1796_v50 = vpop.f32.mrb[10].mxu0 }
 0xfd1   : > { %v1800_v32 = vmul.f32 0.125, %v1796_v50  ;;  %v3595_v33 = vpop.f32.mrb[11].mxu0 }
 0xfd3   : > { %v1801_v34 = vsel %vm693_vm2, %v1800_v32, -inf }
 0xfd4   : > { %1802 = vmax.xlane.f32.xlu0 %v1801_v34  ;;  %v3215_v34 = vld [vmem:[%s5382_s4 + $0xf0] ss:$0 sm:$0xff] }
0x1061   : > { %v1803_v35 = vpop.xlane.xlu0 %1802 }
0x1062   : > { %v1804_v36 = vsub.f32 %v1800_v32, %v1803_v35 }
0x1064   : > { %v1805_v37 = vmul.f32 1.442695, %v1804_v36  ;;  %v3216_v36 = vld [vmem:[%s5382_s4 + $0xe8] ss:$0 sm:$0xff] }
0x1066   : > { %4206 = vpow2.f32 %v1805_v37  ;;  %v2117_v37 = vld [vmem:[%s5382_s4 + $0x300] sm:$0xff] }
0x1070   : > { %v4207_v38 = vpop.eup %4206 }
0x1071   : > { %v1807_v39 = vsel %vm693_vm2, %v4207_v38, 0.0 }
0x1072   : > { %1808 = vadd.xlane.f32.xlu0 %v1807_v39 }
0x10ff   : > { %v1809_v40 = vpop.xlane.xlu0 %1808 }
0x1100   : > { %4208 = vrcp.f32 %v1809_v40 }
0x110a   : > { %v4209_v41 = vpop.eup %4208 }
0x110b   : > { %v1811_v61 = vmul.f32 %v4209_v41, %v4207_v38  ;;  %v2118_v38 = vld [vmem:[%s5382_s4 + $0x308] sm:$0xff] }
0x110c   : > { %v4040_v41 = vpack.c.bf16 %v2118_v38, %v2117_v37  ;;  %v2638_v37 = vld [vmem:[%s5382_s4 + $0x2c0] sm:$0xff] }
0x110d   : > { %3601 = vmatmul.mubr.msk.f32.vlgmr.msra.gmra.mrb[12].mxu0 %vm693_vm2, %v1811_v61  ;;  %v2119_v61 = vld [vmem:[%s5382_s4 + $0x310] sm:$0xff] }
0x110e   : > { %3619 = vmatprep.mubr.msk.f32.mxu0 %vm4297_vm3, %v4295_v20  ;;  %4002 = vmatpush3.bf16.msra.mxu0 %v4001_v44  ;;  %v3222_v44 = vld [vmem:[%s5382_s4 + $0x2e8] ss:$0 sm:$0xff] }
0x110f   : > { %4003 = vmatprep.subr.bf16.mxu0 %v4294_v3 }
0x1112   : > { %4005 = vmatpush3.bf16.msra.mxu0 %v4004_v59 }
0x1113   : > { %4006 = vmatprep.subr.bf16.mxu0 %v4294_v3 }
0x1116   : > { %4008 = vmatpush3.bf16.msra.mxu0 %v4007_v60 }
0x1117   : > { %4009 = vmatprep.subr.bf16.mxu0 %v4294_v3 }
0x111a   : > { %4011 = vmatpush3.bf16.msra.mxu0 %v4010_v2 }
0x111b   : > { %4037 = vmatprep.subr.bf16.mxu0 %v4036_v5 }
0x11e0   : > { %v1881_v42 = vpop.f32.mrb[12].mxu0 }
0x11e1   : > { %v1885_v45 = vadd.f32 %v1881_v42, %v1444_v10  ;;  %v3602_v47 = vpop.f32.mrb[13].mxu0  ;;  %v2001_v10 = vld [vmem:[%s5382_s4 + $0x138] sm:$0xff] }
0x11e2   : > { %v4016_v11 = vpack.c.bf16 %v2001_v10, %v2000_v8  ;;  %v2120_v42 = vld [vmem:[%s5382_s4 + $0x318] sm:$0xff]  ;;  %v2121_v47 = vld [vmem:[%s5382_s4 + $0x320] sm:$0xff] }
0x11e3   : > { %v1886_v51 = vsel %vm364_vm0, %v1885_v45, 0.0  ;;  %v2204_v10 = vld [vmem:[%s5383_s5 + $0xa0] sm:$0xff] }
0x11e4   : > { %1887 = vadd.xlane.f32.xlu0 %v1886_v51  ;;  %4017 = vmatpush3.bf16.msra.mxu1 %v4016_v11  ;;  %v2122_v51 = vld [vmem:[%s5382_s4 + $0x328] sm:$0xff]  ;;  %v4053_v11 = vpack.c.bf16 %v2204_v10, %v2203_v9 }
0x11e5   : > { %4018 = vmatprep.subr.bf16.mxu1 %v4294_v3 }
0x11e8   : > { %4020 = vmatpush3.bf16.msra.mxu1 %v4019_v15  ;;  %v4056_v15 = vpack.c.bf16 %v2206_v14, %v2205_v12 }
0x11e9   : > { %4021 = vmatprep.subr.bf16.mxu1 %v4294_v3 }
0x11ec   : > { %4023 = vmatpush3.bf16.msra.mxu1 %v4022_v49  ;;  %v4059_v49 = vpack.c.bf16 %v2208_v17, %v2207_v16 }
0x11ed   : > { %4024 = vmatprep.subr.bf16.mxu1 %v4294_v3 }
0x11f0   : > { %4026 = vmatpush3.bf16.msra.mxu1 %v4025_v22  ;;  %v4062_v22 = vpack.c.bf16 %v2210_v21, %v2209_v18 }
0x11f1   : > { %4027 = vmatprep.subr.bf16.mxu1 %v4294_v3 }
0x11f4   : > { %4029 = vmatpush3.bf16.msra.mxu1 %v4028_v25 }
0x11f5   : > { %4030 = vmatprep.subr.bf16.mxu1 %v4294_v3 }
0x11f8   : > { %4032 = vmatpush3.bf16.msra.mxu1 %v4031_v28 }
0x11f9   : > { %4033 = vmatprep.subr.bf16.mxu1 %v4294_v3 }
0x1271   : > { %v1888_v53 = vpop.xlane.xlu0 %1887 }
0x1272   : > { %v1889_v54 = vmul.f32 0.015625, %v1888_v53  ;;  %v4048_v53 = vpack.c.bf16 %v2122_v51, %v2121_v47  ;;  %v3225_v51 = vld [vmem:[%s5383_s5 + $0x90] ss:$0 sm:$0xff] }
0x1274   : > { %v4951_v0 = vsub.f32 %v1885_v45, %v1889_v54  ;;  %v4044_v45 = vpack.c.bf16 %v2120_v42, %v2119_v61  ;;  %v2013_v54 = vld [vmem:[%s5382_s4 + $0x198] sm:$0xff]  ;;  %v2642_v42 = vld [vmem:[%s5382_s4 + $0x2e0] sm:$0xff] }
0x1275   : > { %v2641_v61 = vld [vmem:[%s5382_s4 + $0x2d8] sm:$0xff] }
0x1276   : > { %v1891_v55 = vmul.f32 %v4951_v0, %v4951_v0 }
0x1278   : > { %v1892_v56 = vsel %vm364_vm0, %v1891_v55, 0.0  ;;  %v3217_v55 = vld [vmem:[%s5383_s5] ss:$0 sm:$0xff] }
0x1279   : > { %1893 = vadd.xlane.f32.xlu0 %v1892_v56 }
0x1306   : > { %v1894_v30 = vpop.xlane.xlu0 %1893 }
0x1307   : > { %v1895_v50 = vmul.f32 0.015625, %v1894_v30  ;;  %v2635_v30 = vld [vmem:[%s5382_s4 + $0x2a8] sm:$0xff] }
0x1309   : > { %v1896_v32 = vadd.f32 1e-06, %v1895_v50  ;;  %v2636_v50 = vld [vmem:[%s5382_s4 + $0x2b0] sm:$0xff] }
0x130b   : > { %4210 = vrsqrt.f32 %v1896_v32  ;;  %v3221_v32 = vld [vmem:[%s5382_s4 + $0xf8] ss:$0 sm:$0xff] }
0x1315   : > { %v4211_v33 = vpop.eup %4210 }
0x1316   : > { %v1898_v35 = vmul.f32 %v4211_v33, %v4951_v0 }
0x1318   : > { %v1904_v39 = vmul.f32 %v3215_v34, %v1898_v35  ;;  %v4081_v34 = vpack.c.bf16 %v2636_v50, %v2635_v30  ;;  %v2524_v30 = vld [vmem:[%s5381_s3 + $0x58] sm:$0xff] }
0x131a   : > { %v1910_v40 = vadd.f32 %v3216_v36, %v1904_v39  ;;  %v2637_v36 = vld [vmem:[%s5382_s4 + $0x2b8] sm:$0xff]  ;;  %v2639_v39 = vld [vmem:[%s5382_s4 + $0x2c8] sm:$0xff] }
0x131b   : > { %v4084_v38 = vpack.c.bf16 %v2638_v37, %v2637_v36  ;;  %v2527_v36 = vld [vmem:[%s5381_s3 + $0x70] sm:$0xff]  ;;  %v2528_v37 = vld [vmem:[%s5381_s3 + $0x78] sm:$0xff] }
0x131c   : > { %3620 = vmatmul.mubr.msk.f32.vlgmr.msra.gmra.mrb[14].mxu0 %vm364_vm0, %v1910_v40 }
0x131d   : > { %4039 = vmatpush3.bf16.msra.mxu0 %v4036_v5  ;;  %3673 = vmatprep.mubr.msk.f32.mxu0 %vm364_vm0, %v4830_v19  ;;  %v2012_v19 = vld [vmem:[%s5382_s4 + $0x190] sm:$0xff] }
0x131e   : > { %4041 = vmatprep.subr.bf16.mxu0 %v4040_v41  ;;  %v4034_v0 = vpack.c.bf16 %v2013_v54, %v2012_v19 }
0x1320   : > { %4035 = vmatpush3.bf16.msra.mxu1 %v4034_v0 }
0x1321   : > { %4043 = vmatpush3.bf16.msra.mxu0 %v4040_v41 }
0x1322   : > { %4045 = vmatprep.subr.bf16.mxu0 %v4044_v45 }
0x1325   : > { %4047 = vmatpush3.bf16.msra.mxu0 %v4044_v45  ;;  %v4090_v45 = vpack.c.bf16 %v2642_v42, %v2641_v61 }
0x1326   : > { %4049 = vmatprep.subr.bf16.mxu0 %v4048_v53 }
0x1329   : > { %4051 = vmatpush3.bf16.msra.mxu0 %v4048_v53 }
0x132a   : > { %4052 = vmatprep.subr.bf16.mxu0 %v4294_v3 }
0x132c   : > { %3674 = vmatmul.mubr.msk.f32.vlgmr.msra.gmra.mrb[16].mxu0 %vm364_vm0, %v4854_v31 }
0x132d   : > { %3692 = vmatprep.mubr.msk.f32.mxu0 %vm4297_vm3, %v4295_v20  ;;  %4054 = vmatpush3.bf16.msra.mxu0 %v4053_v11 }
0x132e   : > { %4055 = vmatprep.subr.bf16.mxu0 %v4294_v3 }
0x1331   : > { %4057 = vmatpush3.bf16.msra.mxu0 %v4056_v15 }
0x1332   : > { %4058 = vmatprep.subr.bf16.mxu0 %v4294_v3 }
0x1335   : > { %4060 = vmatpush3.bf16.msra.mxu0 %v4059_v49 }
0x1336   : > { %4061 = vmatprep.subr.bf16.mxu0 %v4294_v3 }
0x1339   : > { %4063 = vmatpush3.bf16.msra.mxu0 %v4062_v22 }
0x133a   : > { %4080 = vmatprep.subr.bf16.mxu0 %v4294_v3 }
0x13ef   : > { %v1993_v56 = vpop.f32.mrb[14].mxu0 }
0x13f0   : > { %v1994_v57 = vadd.f32 %v3217_v55, %v1993_v56  ;;  %v3621_v31 = vpop.f32.mrb[15].mxu0 }
0x13f2   : > { %v1997_v58 = vmax.f32 %v1994_v57, 0.0 }
0x13f4   : > { %3655 = vmatmul.mubr.f32.vlgmr.msra.gmra.mrb[20].mxu1 %v1997_v58 }
0x13ff   : > { %v3675_v43 = vpop.f32.mrb[16].mxu0 }
0x1400   : > { %v5083_v48 = vadd.f32 %v3675_v43, %v3222_v44  ;;  %v2194_v59 = vpop.f32.mrb[17].mxu0 }
0x1401   : > { %v2195_v46 = vadd.f32 %v3222_v44, %v2194_v59 }
0x1403   : > { %3697 = vmatprep.mubr.msk.f32.mxu1 %vm364_vm0, %v2195_v46 }
0x14c7   : > { %v2085_v60 = vpop.f32.mrb[20].mxu1 }
0x14c8   : > { %v2086_v62 = vadd.f32 %v3219_v52, %v2085_v60  ;;  %v3656_v63 = vpop.f32.mrb[21].mxu1 }
0x14ca   : > { %v2089_v1 = vadd.f32 %v2086_v62, %v1910_v40  ;;  %v2640_v40 = vld [vmem:[%s5382_s4 + $0x2d0] sm:$0xff] }
0x14cb   : > { %v4087_v41 = vpack.c.bf16 %v2640_v40, %v2639_v39  ;;  %v2529_v39 = vld [vmem:[%s5381_s3 + $0x80] sm:$0xff]  ;;  %v2530_v40 = vld [vmem:[%s5381_s3 + $0x88] sm:$0xff] }
0x14cc   : > { %v2090_v2 = vsel %vm364_vm0, %v2089_v1, 0.0 }
0x14cd   : > { %2091 = vadd.xlane.f32.xlu0 %v2090_v2 }
0x155a   : > { %v2092_v4 = vpop.xlane.xlu0 %2091 }
0x155b   : > { %v2093_v5 = vmul.f32 0.015625, %v2092_v4 }
0x155d   : > { %v2094_v6 = vsub.f32 %v2089_v1, %v2093_v5 }
0x155f   : > { %v2095_v7 = vmul.f32 %v2094_v6, %v2094_v6 }
0x1561   : > { %v2096_v8 = vsel %vm364_vm0, %v2095_v7, 0.0 }
0x1562   : > { %2097 = vadd.xlane.f32.xlu1 %v2096_v8 }
0x15ef   : > { %v2098_v23 = vpop.xlane.xlu1 %2097 }
0x15f0   : > { %v2099_v24 = vmul.f32 0.015625, %v2098_v23 }
0x15f2   : > { %v2100_v25 = vadd.f32 1e-06, %v2099_v24 }
0x15f4   : > { %4212 = vrsqrt.f32 %v2100_v25 }
0x15fe   : > { %v4213_v26 = vpop.eup %4212 }
0x15ff   : > { %v2102_v28 = vmul.f32 %v4213_v26, %v2094_v6 }
0x1601   : > { %v2108_v33 = vmul.f32 %v3220_v27, %v2102_v28 }
0x1603   : > { %v5131_v35 = vadd.f32 %v3221_v32, %v2108_v33  ;;  %v2525_v32 = vld [vmem:[%s5381_s3 + $0x60] sm:$0xff]  ;;  %v2526_v33 = vld [vmem:[%s5381_s3 + $0x68] sm:$0xff] }
0x1605   : > { %3693 = vmatmul.mubr.msk.f32.vlgmr.msra.gmra.mrb[18].mxu0 %vm364_vm0, %v5131_v35  ;;  %v2648_v47 = vrot.slane %v5131_v35, 1 }
0x1606   : > { %4082 = vmatpush3.bf16.msra.mxu0 %v4081_v34  ;;  %3740 = vmatprep.mubr.msk.f32.mxu0 %vm4297_vm3, %v4295_v20  ;;  %v4068_v34 = vpack.c.bf16 %v2526_v33, %v2525_v32 }
0x1607   : > { %4083 = vmatprep.subr.bf16.mxu0 %v4294_v3 }
0x160a   : > { %4085 = vmatpush3.bf16.msra.mxu0 %v4084_v38  ;;  %v4072_v38 = vpack.c.bf16 %v2528_v37, %v2527_v36 }
0x160b   : > { %4086 = vmatprep.subr.bf16.mxu0 %v4294_v3 }
0x160e   : > { %4088 = vmatpush3.bf16.msra.mxu0 %v4087_v41  ;;  %v4076_v41 = vpack.c.bf16 %v2530_v40, %v2529_v39  ;;  %v2891_v39 = vld [vmem:[%s5382_s4 + $0x340] sm:$0xff] }
0x160f   : > { %4089 = vmatprep.subr.bf16.mxu0 %v4294_v3  ;;  %v3239_v40 = vld [vmem:[%s5381_s3] ss:$0 sm:$0xff] }
0x1612   : > { %4091 = vmatpush3.bf16.msra.mxu0 %v4090_v45 }
0x1613   : > { %4104 = vmatprep.subr.bf16.mxu0 %v4294_v3 }
0x1615   : > { %3741 = vmatmul.mubr.msk.f32.vlgmr.msra.gmra.mrb[20].mxu0 %vm364_vm0, %v2648_v47 }
0x1616   : > { %3766 = vmatprep.mubr.msk.f32.mxu0 %vm4297_vm3, %v4295_v20 }
0x16d8   : > { %v2285_v53 = vpop.f32.mrb[18].mxu0 }
0x16d9   : > { %v2286_v19 = vadd.f32 %v3225_v51, %v2285_v53  ;;  %v3694_v54 = vpop.f32.mrb[19].mxu0 }
0x16da   : > { %v3232_v54 = vld [vmem:[%s5382_s4 + $0x110] ss:$0 sm:$0xff] }
0x16db   : > { %3695 = vmatprep.subr.msk.mxu1 %vm364_vm0, %v2286_v19 }
0x16dc   : > { %3696 = vmatpush3.xpose.msk.msra.mxu1 %vm364_vm0, %v2286_v19 }
0x16df   : > { %3698 = vmatmul.mubr.msk.f32.vlgmr.msra.gmra.mrb[22].mxu1 %vm364_vm0, %v5083_v48 }
0x16e8   : > { %v5170_v0 = vpop.f32.mrb[20].mxu0 }
0x16e9   : > { %v3742_v55 = vpop.f32.mrb[21].mxu0 }
0x17b2   : > { %v3699_v56 = vpop.f32.mrb[22].mxu1 }
0x17b3   : > { %v2374_v57 = vmul.f32 0.125, %v3699_v56  ;;  %v2364_v31 = vpop.f32.mrb[23].mxu1  ;;  %v3233_v56 = vld [vmem:[%s5382_s4 + $0x108] ss:$0 sm:$0xff] }
0x17b4   : > { %v2373_v58 = vmul.f32 0.125, %v2364_v31 }
0x17b5   : > { %v2378_v44 = vsel %vm1334_vm4, %v2374_v57, -inf }
0x17b6   : > { %2379 = vmax.xlane.f32.xlu1 %v2378_v44  ;;  %v2375_v43 = vsel %vm1334_vm4, %v2373_v58, -inf }
0x17b7   : > { %2376 = vmax.xlane.f32.xlu0 %v2375_v43  ;;  %v2722_v43 = vld [vmem:[%s5381_s3 + $0x8] sm:$0xff] }
0x1843   : > { %v2380_v59 = vpop.xlane.xlu1 %2379 }
0x1844   : > { %v2382_v46 = vsub.f32 %v2374_v57, %v2380_v59  ;;  %v2377_v52 = vpop.xlane.xlu0 %2376  ;;  %v2723_v59 = vld [vmem:[%s5381_s3 + $0x10] sm:$0xff] }
0x1845   : > { %v2381_v60 = vsub.f32 %v2373_v58, %v2377_v52  ;;  %v4093_v52 = vpack.c.bf16 %v2723_v59, %v2722_v43  ;;  %v2974_v43 = vld [vmem:[%s5380_s2 + $0x28] sm:$0xff]  ;;  %v2975_v59 = vld [vmem:[%s5380_s2 + $0x30] sm:$0xff] }
0x1846   : > { %v2385_v62 = vmul.f32 1.442695, %v2382_v46 }
0x1847   : > { %v2383_v63 = vmul.f32 1.442695, %v2381_v60 }
0x1848   : > { %4214 = vpow2.f32 %v2385_v62  ;;  %v2724_v62 = vld [vmem:[%s5381_s3 + $0x18] sm:$0xff] }
0x1849   : > { %4216 = vpow2.f32 %v2383_v63  ;;  %v2725_v63 = vld [vmem:[%s5381_s3 + $0x20] sm:$0xff] }
0x1852   : > { %v4215_v48 = vpop.eup %4214 }
0x1853   : > { %v4217_v1 = vpop.eup %4216  ;;  %v2390_v2 = vsel %vm1334_vm4, %v4215_v48, 0.0 }
0x1854   : > { %2391 = vadd.xlane.f32.xlu1 %v2390_v2  ;;  %v2387_v4 = vsel %vm1334_vm4, %v4217_v1, 0.0  ;;  %v2727_v2 = vld [vmem:[%s5381_s3 + $0x30] sm:$0xff] }
0x1855   : > { %2388 = vadd.xlane.f32.xlu0 %v2387_v4 }
0x186b   : > { %2397 = vrot.lane.b32.xlu0 %v2286_v19, %s4296_s19  ;;  %s3074_s19 = sshll.u32 %s317_s22, 4  ;;  %s5338_s19 = int_to_ptr.vmem [resolvable:$true] %s3074_s19 }
0x186c   : > { %p4237_p0 = scmp.lt.s32.totalorder %s5338_s19, %s4235_s13 }
0x18e1   : > { %v2392_v5 = vpop.xlane.xlu1 %2391 }
0x18e2   : > { %4218 = vrcp.f32 %v2392_v5  ;;  %v2389_v6 = vpop.xlane.xlu0 %2388  ;;  %v2728_v5 = vld [vmem:[%s5381_s3 + $0x38] sm:$0xff] }
0x18e3   : > { %4220 = vrcp.f32 %v2389_v6  ;;  %v2729_v6 = vld [vmem:[%s5381_s3 + $0x40] sm:$0xff] }
0x18e6   : > { %v2398_v7 = vpop.permute.xlu0 %2397 }
0x18e7   : > { %3700 = vmatprep.subr.mxu1 %v2398_v7 }
0x18e8   : > { %3701 = vmatpush3.msra.mxu1 %v2398_v7  ;;  %v3237_v7 = vld [vmem:[%s5382_s4 + $0x2a0] ss:$0 sm:$0xff] }
0x18ec   : > { %v4219_v8 = vpop.eup %4218 }
0x18ed   : > { %v4221_v9 = vpop.eup %4220  ;;  %v2396_v11 = vmul.f32 %v4219_v8, %v4215_v48  ;;  %v4096_v48 = vpack.c.bf16 %v2725_v63, %v2724_v62  ;;  %v4102_v8 = vpack.c.bf16 %v2729_v6, %v2728_v5  ;;  %v2978_v6 = vld [vmem:[%s5380_s2] sm:$0x1] }
0x18ee   : > { %v2395_v10 = vmul.f32 %v4221_v9, %v4217_v1  ;;  %v2726_v1 = vld [vmem:[%s5381_s3 + $0x28] sm:$0xff]  ;;  %v2718_v9 = vadd.f32 %v3237_v7, %v5170_v0 }
0x18ef   : > { %v4099_v4 = vpack.c.bf16 %v2727_v2, %v2726_v1 }
0x18f0   : > { %3702 = vmatprep.mubr.msk.f32.mxu1 %vm1334_vm4, %v2395_v10  ;;  %v2721_v10 = vmax.f32 %v2718_v9, 0.0 }
0x18f1   : > { %3703 = vmatmul.mubr.msk.f32.vlgmr.msra.gmra.mrb[24].mxu1 %vm1334_vm4, %v2396_v11  ;;  %v3234_v11 = vld [vmem:[%s5381_s3 + $0x48] ss:$0 sm:$0xff] }
0x19c4   : > { %v3704_v12 = vpop.f32.mrb[24].mxu1 }
0x19c5   : > { %v2472_v14 = vpop.f32.mrb[25].mxu1  ;;  %v2482_v16 = vadd.f32 %v3704_v12, %v4848_v29  ;;  %v2523_v29 = vld [vmem:[%s5381_s3 + $0x50] sm:$0xff] }
0x19c6   : > { %v2481_v15 = vadd.f32 %v2472_v14, %v4818_v13  ;;  %v4064_v50 = vpack.c.bf16 %v2524_v30, %v2523_v29 }
0x19c7   : > { %v2486_v49 = vsel %vm364_vm0, %v2482_v16, 0.0 }
0x19c8   : > { %v2483_v17 = vsel %vm364_vm0, %v2481_v15, 0.0  ;;  %4065 = vmatprep.subr.bf16.mxu1 %v4064_v50 }
0x19c9   : > { %2484 = vadd.xlane.f32.xlu1 %v2483_v17  ;;  %4067 = vmatpush3.bf16.msra.mxu1 %v4064_v50 }
0x19ca   : > { %4069 = vmatprep.subr.bf16.mxu1 %v4068_v34 }
0x19cd   : > { %2487 = vadd.xlane.f32.xlu1 %v2486_v49  ;;  %4071 = vmatpush3.bf16.msra.mxu1 %v4068_v34 }
0x19ce   : > { %4073 = vmatprep.subr.bf16.mxu1 %v4072_v38 }
0x19d1   : > { %4075 = vmatpush3.bf16.msra.mxu1 %v4072_v38  ;;  %v2890_v38 = vld [vmem:[%s5382_s4 + $0x338] sm:$0xff] }
0x19d2   : > { %4077 = vmatprep.subr.bf16.mxu1 %v4076_v41 }
0x19d5   : > { %4079 = vmatpush3.bf16.msra.mxu1 %v4076_v41  ;;  %v4109_v41 = vpack.c.bf16 %v2891_v39, %v2890_v38 }
0x19d6   : > { %4092 = vmatprep.subr.bf16.mxu1 %v4294_v3 }
0x1a56   : > { %v2485_v18 = vpop.xlane.xlu1 %2484 }
0x1a57   : > { %v2489_v21 = vmul.f32 0.015625, %v2485_v18 }
0x1a59   : > { %v2491_v22 = vsub.f32 %v2481_v15, %v2489_v21 }
0x1a5a   : > { %v2488_v23 = vpop.xlane.xlu1 %2487 }
0x1a5b   : > { %v2490_v24 = vmul.f32 0.015625, %v2488_v23  ;;  %v2493_v25 = vmul.f32 %v2491_v22, %v2491_v22 }
0x1a5d   : > { %v2492_v26 = vsub.f32 %v2482_v16, %v2490_v24  ;;  %v2495_v27 = vsel %vm364_vm0, %v2493_v25, 0.0 }
0x1a5e   : > { %2496 = vadd.xlane.f32.xlu1 %v2495_v27 }
0x1a5f   : > { %v2494_v28 = vmul.f32 %v2492_v26, %v2492_v26 }
0x1a61   : > { %v2498_v13 = vsel %vm364_vm0, %v2494_v28, 0.0 }
0x1a62   : > { %2499 = vadd.xlane.f32.xlu1 %v2498_v13 }
0x1aeb   : > { %v2497_v61 = vpop.xlane.xlu1 %2496 }
0x1aec   : > { %v2501_v42 = vmul.f32 0.015625, %v2497_v61 }
0x1aee   : > { %v2503_v45 = vadd.f32 1e-06, %v2501_v42  ;;  %v2892_v42 = vld [vmem:[%s5382_s4 + $0x348] sm:$0xff] }
0x1aef   : > { %v2500_v47 = vpop.xlane.xlu1 %2499 }
0x1af0   : > { %4222 = vrsqrt.f32 %v2503_v45  ;;  %v2502_v51 = vmul.f32 0.015625, %v2500_v47  ;;  %v2893_v45 = vld [vmem:[%s5382_s4 + $0x350] sm:$0xff] }
0x1af1   : > { %v4112_v47 = vpack.c.bf16 %v2893_v45, %v2892_v42 }
0x1af2   : > { %v2504_v53 = vadd.f32 1e-06, %v2502_v51  ;;  %v2894_v51 = vld [vmem:[%s5382_s4 + $0x358] sm:$0xff] }
0x1af4   : > { %4224 = vrsqrt.f32 %v2504_v53  ;;  %v2895_v53 = vld [vmem:[%s5382_s4 + $0x360] sm:$0xff] }
0x1afa   : > { %v4223_v19 = vpop.eup %4222 }
0x1afb   : > { %v2507_v55 = vmul.f32 %v4223_v19, %v2491_v22  ;;  %v4115_v19 = vpack.c.bf16 %v2895_v53, %v2894_v51 }
0x1afd   : > { %v2514_v57 = vmul.f32 %v3232_v54, %v2507_v55 }
0x1afe   : > { %v4225_v31 = vpop.eup %4224 }
0x1aff   : > { %v2508_v58 = vmul.f32 %v4225_v31, %v2492_v26  ;;  %v2521_v44 = vadd.f32 %v3233_v56, %v2514_v57  ;;  %v2971_v57 = vld [vmem:[%s5380_s2 + $0x10] sm:$0xff]  ;;  %v2972_v31 = vld [vmem:[%s5380_s2 + $0x18] sm:$0xff] }
0x1b01   : > { %v2515_v46 = vmul.f32 %v3232_v54, %v2508_v58  ;;  %3721 = vmatprep.mubr.msk.f32.mxu1 %vm364_vm0, %v2521_v44  ;;  %v2896_v54 = vld [vmem:[%s5382_s4 + $0x368] sm:$0xff]  ;;  %v2973_v44 = vld [vmem:[%s5380_s2 + $0x20] sm:$0xff] }
0x1b03   : > { %v2522_v60 = vadd.f32 %v3233_v56, %v2515_v46  ;;  %v2970_v56 = vld [vmem:[%s5380_s2 + $0x8] sm:$0xff]  ;;  %v4127_v46 = vpack.c.bf16 %v2975_v59, %v2974_v43 }
0x1b04   : > { %v4121_v58 = vpack.c.bf16 %v2971_v57, %v2970_v56 }
0x1b05   : > { %3722 = vmatmul.mubr.msk.f32.vlgmr.msra.gmra.mrb[26].mxu1 %vm364_vm0, %v2522_v60  ;;  %v2977_v60 = vld [vmem:[%s5380_s2 + $0x40] sm:$0xff] }
0x1b06   : > { %4094 = vmatpush3.bf16.msra.mxu1 %v4093_v52  ;;  %3759 = vmatprep.mubr.msk.f32.mxu1 %vm4297_vm3, %v4295_v20  ;;  %v2976_v52 = vld [vmem:[%s5380_s2 + $0x38] sm:$0xff] }
0x1b07   : > { %4095 = vmatprep.subr.bf16.mxu1 %v4294_v3  ;;  %v4130_v62 = vpack.c.bf16 %v2977_v60, %v2976_v52 }
0x1b0a   : > { %4097 = vmatpush3.bf16.msra.mxu1 %v4096_v48  ;;  %v2898_v48 = vld [vmem:[%s5382_s4 + $0x330] sm:$0x1] }
0x1b0b   : > { %4098 = vmatprep.subr.bf16.mxu1 %v4294_v3 }
0x1b0e   : > { %4100 = vmatpush3.bf16.msra.mxu1 %v4099_v4 }
0x1b0f   : > { %4101 = vmatprep.subr.bf16.mxu1 %v4294_v3 }
0x1b12   : > { %4103 = vmatpush3.bf16.msra.mxu1 %v4102_v8 }
0x1b13   : > { %4120 = vmatprep.subr.bf16.mxu1 %v4294_v3 }
0x1b15   : > { %3760 = vmatmul.mubr.msk.f32.vlgmr.msra.gmra.mrb[28].mxu1 %vm364_vm0, %v2721_v10 }
0x1b16   : > { %3804 = vmatprep.mubr.msk.f32.mxu1 %vm4297_vm3, %v4295_v20  ;;  %4122 = vmatpush3.bf16.msra.mxu1 %v4121_v58 }
0x1b17   : > { %4123 = vmatprep.subr.bf16.mxu1 %v4294_v3 }
0x1bd8   : > { %v3723_v12 = vpop.f32.mrb[26].mxu1 }
0x1bd9   : > { %v2614_v14 = vadd.f32 %v3723_v12, %v3234_v11  ;;  %v2608_v15 = vpop.f32.mrb[27].mxu1 }
0x1bda   : > { %v2609_v16 = vadd.f32 %v3234_v11, %v2608_v15 }
0x1bdb   : > { %v2618_v0 = vmul.f32 %v2614_v14, %v2614_v14 }
0x1bdc   : > { %v2617_v17 = vmul.f32 %v2609_v16, %v2609_v16 }
0x1bdd   : > { %v2620_v49 = vmul.f32 %v2618_v0, %v2614_v14 }
0x1bde   : > { %v2619_v18 = vmul.f32 %v2617_v17, %v2609_v16 }
0x1bdf   : > { %v2622_v21 = vmul.f32 0.044715, %v2620_v49 }
0x1be0   : > { %v2621_v22 = vmul.f32 0.044715, %v2619_v18 }
0x1be1   : > { %v2624_v23 = vadd.f32 %v2622_v21, %v2614_v14 }
0x1be2   : > { %v2623_v24 = vadd.f32 %v2621_v22, %v2609_v16 }
0x1be3   : > { %v2626_v25 = vmul.f32 0.7978846, %v2624_v23 }
0x1be4   : > { %v2625_v26 = vmul.f32 0.7978846, %v2623_v24 }
0x1be5   : > { %4226 = vtanh.f32 %v2626_v25 }
0x1be6   : > { %4228 = vtanh.f32 %v2625_v26 }
0x1be8   : > { %v2804_v27 = vpop.f32.mrb[28].mxu1 }
0x1be9   : > { %v3761_v28 = vpop.f32.mrb[29].mxu1  ;;  %v2805_v61 = vadd.f32 %v3239_v40, %v2804_v27 }
0x1bef   : > { %v4227_v13 = vpop.eup %4226 }
0x1bf0   : > { %v4229_v29 = vpop.eup %4228  ;;  %v2630_v30 = vadd.f32 1.0, %v4227_v13 }
0x1bf1   : > { %v2629_v50 = vadd.f32 1.0, %v4229_v29 }
0x1bf2   : > { %v2632_v32 = vmul.f32 0.5, %v2630_v30 }
0x1bf3   : > { %v2631_v33 = vmul.f32 0.5, %v2629_v50 }
0x1bf4   : > { %v2634_v34 = vmul.f32 %v2632_v32, %v2614_v14 }
0x1bf5   : > { %v2633_v36 = vmul.f32 %v2631_v33, %v2609_v16 }
0x1bf7   : > { %v4105_v37 = vpack.c.bf16 %v2634_v34, %v2633_v36 }
0x1bf9   : > { %4107 = vmatpush3.bf16.xpose.msk.msra.mxu0 %vm4106_vm6, %v4105_v37 }
0x1bfa   : > { %4108 = vmatprep.subr.bf16.mxu0 %v4294_v3 }
0x1c00   : > { %3767 = vmatmul.mubr.msk.f32.vlgmr.msra.gmra.mrb[22].mxu0 %vm2808_vm5, %v2805_v61 }
0x1c01   : > { %4110 = vmatpush3.bf16.msra.mxu0 %v4109_v41  ;;  %3785 = vmatprep.mubr.msk.f32.mxu0 %vm4297_vm3, %v4295_v20  ;;  %v2897_v20 = vld [vmem:[%s5382_s4 + $0x370] sm:$0xff] }
0x1c02   : > { %4111 = vmatprep.subr.bf16.mxu0 %v4294_v3  ;;  %v4118_v55 = vpack.c.bf16 %v2897_v20, %v2896_v54 }
0x1c05   : > { %4113 = vmatpush3.bf16.msra.mxu0 %v4112_v47 }
0x1c06   : > { %4114 = vmatprep.subr.bf16.mxu0 %v4294_v3 }
0x1c09   : > { %4116 = vmatpush3.bf16.msra.mxu0 %v4115_v19 }
0x1c0a   : > { %4117 = vmatprep.subr.bf16.mxu0 %v4294_v3 }
0x1c0d   : > { %4119 = vmatpush3.bf16.msra.mxu0 %v4118_v55 }
0x1c10   : > { %3786 = vmatmul.mubr.msk.f32.vlgmr.msra.gmra.mrb[24].mxu0 %vm364_vm0, %v5131_v35  ;;  %v4124_v35 = vpack.c.bf16 %v2973_v44, %v2972_v31 }
0x1c12   : > { %4125 = vmatpush3.bf16.msra.mxu1 %v4124_v35 }
0x1c13   : > { %4126 = vmatprep.subr.bf16.mxu1 %v4294_v3 }
0x1c16   : > { %4128 = vmatpush3.bf16.msra.mxu1 %v4127_v46 }
0x1c17   : > { %4129 = vmatprep.subr.bf16.mxu1 %v4294_v3 }
0x1c1a   : > { %4131 = vmatpush3.bf16.msra.mxu1 %v4130_v62 }
0x1cd3   : > { %v2884_v63 = vpop.f32.mrb[22].mxu0 }
0x1cd4   : > { %2889 = vst.msk [vmem:[%s330_s12] sm:$0xf] %vm2888_vm7, %v2884_v63  ;;  %v3768_v3 = vpop.f32.mrb[23].mxu0  ;;  %s4230_s12 = scalar_lea.vmem %s5338_s19, 16 }
0x1cd5   : > { %p4231_p11 = scmp.ne.s32.totalorder %s5338_s19, %s4230_s12  ;;  %p4238_p1 = scmp.lt.s32.totalorder %s4236_s17, %s4230_s12 }
0x1cd7   : > { %p4232_p12 = pnand %p4231_p11, %p4382_p5  ;;  %p4239_p2 = por %p4238_p1, %p4237_p0 }
0x1cd9   : > { %p4233_p13 = pneg %p4232_p12 }
0x1cdb   : > { %p4240_p3 = pnand %p4239_p2, %p4233_p13 }
0x1ce3   : > { %v2965_v1 = vpop.f32.mrb[24].mxu0 }
0x1ce4   : > { %v2966_v2 = vadd.f32 %v2965_v1, %v2898_v48  ;;  %v3787_v4 = vpop.f32.mrb[25].mxu0 }
0x1ce6   : > { %v2969_v5 = vmax.f32 %v2966_v2, 0.0 }
0x1ce8   : > { %3805 = vmatmul.mubr.msk.f32.vlgmr.msra.gmra.mrb[30].mxu1 %vm364_vm0, %v2969_v5 }
0x1dbb   : > { %v3048_v7 = vpop.f32.mrb[30].mxu1 }
0x1dbc   : > { %v3049_v8 = vadd.f32 %v3048_v7, %v2978_v6  ;;  %v3806_v9 = vpop.f32.mrb[31].mxu1 }
0x1dbe   : > { %3053 = vst.msk [vmem:[%s317_s22] sm:$0x1] %vm3052_vm8, %v3049_v8 }
0x1dbf   : > { %4243 = shalt.err (!%p4240_p3)
}
0x1dc0   : > { %s4244_s25 = scalar_lea.hbm %s5336_s26, 16  ;;  %s4248_s21 = scalar_lea.hbm %s5386_s8, 32 }
0x1dc1   : > { %p4245_p4 = scmp.ne.s32.totalorder %s5336_s26, %s4244_s25  ;;  %p4249_p9 = scmp.lt.u32.totalorder %s5336_s26, %s5386_s8 }
0x1dc2   : > { %p4250_p10 = scmp.lt.u32.totalorder %s4248_s21, %s4244_s25  ;;  %p4252_p12 = scmp.lt.u32.totalorder %s4244_s25, %s5336_s26 }
0x1dc3   : > { %p4246_p7 = pnand %p4245_p4, %p4382_p5 }
0x1dc4   : > { %p4251_p11 = por %p4250_p10, %p4249_p9 }
0x1dc5   : > { %p4247_p8 = pneg %p4246_p7 }
0x1dc6   : > { %p4253_p13 = por %p4252_p12, %p4251_p11 }
0x1dc8   : > { %p4254_p0 = pnand %p4253_p13, %p4247_p8 }
0x1dca   : > { %4257 = shalt.err (!%p4254_p0)
}
0x1dcb   : > { %4132 = dma.vmem_to_hbm [thread:$0]  (%p4382_p5), %s5338_s19, 16, %s5336_s26, %s3059_s10  }
0x1dcc PF: > { %p4138_p1 = scmp.ge.s32.totalorder %s4292_s30, 2  ;;  %s3093_s24 = sand.u32 1, %s4280_s27  }
0x1dcd   : > { %s3094_s12 = scalar_lea.sflag [#allocation3], %s3093_s24 }
0x1dce   : > { %p4135_p2 = pnand %p4138_p1, %p4386_p6 }
0x1dd0   : > { %4275 = dma.done.wait (!%p4135_p2), %s3094_s12, 16  }
0x1dd1   : > { %4277 = vsyncadd (!%p4135_p2), %s3094_s12, 4294967280  ;;  %p19_p3 = scmp.ge.s32.totalorder %s4369_s11, 4   ;;  %s5391_s27 = smov %s4284_s28 }
0x1dd2   : > { %s5392_s28 = smov %s4288_s29  ;;  %s5393_s29 = smov %s4380_s14 }
0x1dd3   : > { %s5394_s30 = smov %s4369_s11  ;;  %21 = sbr.rel (!%p19_p3) target bundleno = 3 (0x3), region = 99 }
0x1dda   :  { %3098 = vsyncpa [#allocation3], 1 }
0x1ddb   :  { %3100 = vsyncpa [#allocation3 + $0x1], 1 }

</bundles_post_ra>
